<compile_context>
chip_gen: v7x
topology: tpu7x:2x2x1
jax: 0.10.0
libtpu: 0.0.40
codegen_flags: <defaults>
</compile_context>

<pallas_src>
import functools
import math

import jax
import jax.numpy as jnp
from jax.experimental import pallas as pl
from jax.experimental.pallas import tpu as pltpu


# ----------------------------------------------------------------------------
# helpers
# ----------------------------------------------------------------------------

def _sublane_quantum(dtype):
    # 8 for f32, 16 for bf16, 32 for int8/fp8.
    return 8 * (4 // jnp.dtype(dtype).itemsize)


def _round_up(x, m):
    return ((x + m - 1) // m) * m


def _pick_tile(n, tile_n, quantum, *, min_tile=512, target_steps=8):
    """Pick a layout-legal row tile.

    - When N is large enough, shrink the tile so the grid has >= target_steps
      steps (v7x 2-TC sharding) without dropping below min_tile rows.
    - A single full-extent block is always legal regardless of quantum;
      partial tiles must be a multiple of the out_dtype sublane quantum.
    """
    if n >= target_steps * min_tile:
        per_core = _round_up(-(-n // target_steps), quantum)
        tile_n = min(tile_n, max(min_tile, per_core))
    if tile_n >= n:
        return n
    return max(quantum, (tile_n // quantum) * quantum)


# ----------------------------------------------------------------------------
# standalone GaussianSmearing kernel
# ----------------------------------------------------------------------------

def _smearing_kernel(dist_ref, offset_ref, out_ref, *, scale):
    # dist_ref:   (tile_n, 1) f32   raw distances
    # offset_ref: (1, G)      f32   offsets pre-scaled by sqrt(-coeff); resident
    # out_ref:    (tile_n, G) out_dtype
    t = dist_ref[...] * scale - offset_ref[...]          # (tile_n, G)
    out_ref[...] = jnp.exp(-(t * t)).astype(out_ref.dtype)


def gaussian_smearing(dist, offset, coeff, *, tile_n=1024,
                      out_dtype=jnp.float32):
    """exp(coeff * (dist.reshape(-1,1) - offset.reshape(1,-1))**2) -> (N, G).

    out_dtype=jnp.bfloat16 is the recommended fast path on write-bound
    v5e/v6e when the consumer tolerates bf16 features (compute stays f32;
    only the final store narrows).  Default float32 matches torch.
    """
    dist2d = jnp.asarray(dist, jnp.float32).reshape(-1, 1)
    n = dist2d.shape[0]
    g = int(offset.shape[0])

    coeff = float(coeff)
    scale = math.sqrt(-coeff)                    # coeff = -0.5/delta**2 < 0
    offset_scaled = (jnp.asarray(offset, jnp.float32) * scale).reshape(1, g)

    q = _sublane_quantum(out_dtype)
    tile_n = _pick_tile(n, tile_n, q)
    grid = (pl.cdiv(n, tile_n),)

    out_itemsize = jnp.dtype(out_dtype).itemsize
    cost = pl.CostEstimate(
        flops=3 * n * g,
        transcendentals=n * g,
        bytes_accessed=n * g * out_itemsize + n * 4 + g * 4,
    )

    return pl.pallas_call(
        functools.partial(_smearing_kernel, scale=scale),
        out_shape=jax.ShapeDtypeStruct((n, g), out_dtype),
        grid_spec=pltpu.PrefetchScalarGridSpec(
            num_scalar_prefetch=0,
            grid=grid,
            in_specs=[
                pl.BlockSpec((tile_n, 1), lambda i: (i, 0)),   # distances
                pl.BlockSpec((1, g), lambda i: (0, 0)),        # offsets, resident
            ],
            out_specs=pl.BlockSpec((tile_n, g), lambda i: (i, 0)),
        ),
        compiler_params=pltpu.CompilerParams(
            dimension_semantics=("parallel",),
        ),
        cost_estimate=cost,
    )(dist2d, offset_scaled)


# ----------------------------------------------------------------------------
# fused GaussianSmearing -> Linear kernel (rbf never touches HBM)
# ----------------------------------------------------------------------------

def _smearing_linear_kernel(dist_ref, offset_ref, w_ref, b_ref, out_ref, *,
                            scale):
    # dist_ref:   (tile_n, 1)  f32
    # offset_ref: (1, Gp)      f32   scaled offsets (padded to 128), resident
    # w_ref:      (Gp, H)      weight (zero-padded rows), resident
    # b_ref:      (1, H)       f32 bias, resident
    # out_ref:    (tile_n, H)
    t = dist_ref[...] * scale - offset_ref[...]           # (tile_n, Gp) f32
    rbf = jnp.exp(-(t * t)).astype(w_ref.dtype)           # stays in VMEM/regs
    acc = jnp.dot(rbf, w_ref[...], preferred_element_type=jnp.float32)
    out_ref[...] = (acc + b_ref[...]).astype(out_ref.dtype)


def gaussian_smearing_linear(dist, offset, coeff, w, b, *, tile_n=1024,
                             out_dtype=jnp.float32):
    """Fused exp(coeff*(d-off)^2) @ w + b  -> (N, H).

    Removes the dominant (N, G) HBM writeback of the standalone kernel.
    w: (G, H) (bf16 recommended for the MXU), b: (H,).  G is padded to a
    multiple of 128 with zero weight rows (free: the padded lanes already
    exist in every vreg).
    """
    dist2d = jnp.asarray(dist, jnp.float32).reshape(-1, 1)
    n = dist2d.shape[0]
    g, h = int(w.shape[0]), int(w.shape[1])

    coeff = float(coeff)
    scale = math.sqrt(-coeff)
    offset_scaled = (jnp.asarray(offset, jnp.float32) * scale).reshape(1, g)
    b2d = jnp.asarray(b, jnp.float32).reshape(1, h)

    # Pad the gaussian axis to a clean, fully aligned MXU K dimension.
    g_pad = _round_up(g, 128)
    w = jnp.asarray(w)
    if g_pad != g:
        offset_scaled = jnp.pad(offset_scaled, ((0, 0), (0, g_pad - g)),
                                mode="edge")
        w = jnp.pad(w, ((0, g_pad - g), (0, 0)))           # zero rows

    q = _sublane_quantum(out_dtype)
    tile_n = _pick_tile(n, tile_n, q)
    grid = (pl.cdiv(n, tile_n),)

    cost = pl.CostEstimate(
        flops=3 * n * g_pad + 2 * n * g_pad * h,
        transcendentals=n * g_pad,
        bytes_accessed=(n * h * jnp.dtype(out_dtype).itemsize + n * 4
                        + g_pad * 4 + g_pad * h * jnp.dtype(w.dtype).itemsize
                        + h * 4),
    )

    return pl.pallas_call(
        functools.partial(_smearing_linear_kernel, scale=scale),
        out_shape=jax.ShapeDtypeStruct((n, h), out_dtype),
        grid_spec=pltpu.PrefetchScalarGridSpec(
            num_scalar_prefetch=0,
            grid=grid,
            in_specs=[
                pl.BlockSpec((tile_n, 1), lambda i: (i, 0)),   # distances
                pl.BlockSpec((1, g_pad), lambda i: (0, 0)),    # offsets, resident
                pl.BlockSpec((g_pad, h), lambda i: (0, 0)),    # weight, resident
                pl.BlockSpec((1, h), lambda i: (0, 0)),        # bias, resident
            ],
            out_specs=pl.BlockSpec((tile_n, h), lambda i: (i, 0)),
        ),
        compiler_params=pltpu.CompilerParams(
            dimension_semantics=("parallel",),
        ),
        cost_estimate=cost,
    )(dist2d, offset_scaled, w, b2d)


# ----------------------------------------------------------------------------
# parameter setup (mirrors torch __init__, no device->host sync)
# ----------------------------------------------------------------------------

def make_gaussian_smearing_params(start=0.0, stop=5.0, num_gaussians=50):
    offset = jnp.linspace(start, stop, num_gaussians, dtype=jnp.float32)
    delta = (float(stop) - float(start)) / (num_gaussians - 1)
    coeff = -0.5 / delta ** 2
    return offset, coeff


# ----------------------------------------------------------------------------
# demo / self-check
# ----------------------------------------------------------------------------

if __name__ == "__main__":
    key = jax.random.PRNGKey(0)
    k_dist, k_small, k_w, k_b = jax.random.split(key, 4)

    start, stop, num_gaussians = 0.0, 5.0, 50
    offset, coeff = make_gaussian_smearing_params(start, stop, num_gaussians)

    # --- standalone kernel, f32 (torch-matching contract) -------------------
    n_edges = 3000                       # multi-step grid, ragged last block
    dist = jax.random.uniform(k_dist, (n_edges,), jnp.float32,
                              minval=0.0, maxval=stop)

    out = jax.block_until_ready(gaussian_smearing(dist, offset, coeff))
    ref = jnp.exp(coeff * (dist[:, None] - offset[None, :]) ** 2)
    assert out.shape == (n_edges, num_gaussians)
    assert out.dtype == jnp.float32
    assert jnp.allclose(out, ref, atol=1e-4, rtol=1e-4)

    # --- standalone kernel, bf16 output (recommended on v5e/v6e) ------------
    out_bf16 = jax.block_until_ready(
        gaussian_smearing(dist, offset, coeff, out_dtype=jnp.bfloat16))
    assert out_bf16.dtype == jnp.bfloat16
    assert jnp.allclose(out_bf16.astype(jnp.float32), ref, atol=8e-3, rtol=2e-2)

    # bf16 with N not a multiple of 16 (single full-extent block path).
    n_odd = 514
    dist_odd = jax.random.uniform(jax.random.PRNGKey(1), (n_odd,), jnp.float32,
                                  minval=0.0, maxval=stop)
    out_odd = jax.block_until_ready(
        gaussian_smearing(dist_odd, offset, coeff, out_dtype=jnp.bfloat16))
    ref_odd = jnp.exp(coeff * (dist_odd[:, None] - offset[None, :]) ** 2)
    assert jnp.allclose(out_odd.astype(jnp.float32), ref_odd,
                        atol=8e-3, rtol=2e-2)

    # --- small-N f32 path ----------------------------------------------------
    n_small = 200
    dist_small = jax.random.uniform(k_small, (n_small,), jnp.float32,
                                    minval=0.0, maxval=stop)
    out_small = jax.block_until_ready(
        gaussian_smearing(dist_small, offset, coeff))
    ref_small = jnp.exp(coeff * (dist_small[:, None] - offset[None, :]) ** 2)
    assert jnp.allclose(out_small, ref_small, atol=1e-4, rtol=1e-4)

    # --- fused smearing -> embedding Linear (the big lever) -----------------
    hidden = 128
    w = (0.1 * jax.random.normal(k_w, (num_gaussians, hidden),
                                 jnp.float32)).astype(jnp.bfloat16)
    bias = 0.1 * jax.random.normal(k_b, (hidden,), jnp.float32)

    fused = jax.block_until_ready(
        gaussian_smearing_linear(dist, offset, coeff, w, bias))
    ref_fused = jnp.dot(ref.astype(jnp.bfloat16), w,
                        preferred_element_type=jnp.float32) + bias[None, :]
    assert fused.shape == (n_edges, hidden)
    assert fused.dtype == jnp.float32
    assert jnp.allclose(fused, ref_fused, atol=1e-2, rtol=2e-2)

    print("KERNEL_OK")
</pallas_src>

<mosaic_0001>
module attributes {stable_mosaic.version = 11 : i64} {
  func.func @_smearing_kernel(%arg0: i32, %arg1: memref<1024x1xf32, #tpu.memory_space<vmem>>, %arg2: memref<1x50xf32, #tpu.memory_space<vmem>>, %arg3: memref<1024x50xf32, #tpu.memory_space<vmem>>) attributes {dimension_semantics = [#tpu.dimension_semantics<parallel>], iteration_bounds = array<i64: 3>, scalar_prefetch = 0 : i64, scratch_operands = 0 : i64, tpu.core_type = #tpu.core_type<tc>, window_params = [{transform_indices = @transform_0, window_bounds = array<i64: 1024, 1>}, {pipeline_mode = #tpu.pipeline_mode<synchronous>, transform_indices = @transform_1, window_bounds = array<i64: 1, 50>}, {transform_indices = @transform_2, window_bounds = array<i64: 1024, 50>}]} {
    %c0 = arith.constant 0 : index
    %c0_0 = arith.constant 0 : index
    %0 = vector.load %arg1[%c0, %c0_0] : memref<1024x1xf32, #tpu.memory_space<vmem>>, vector<1024x1xf32>
    %cst = arith.constant 6.92964649 : f32
    %1 = vector.broadcast %cst : f32 to vector<1024x1xf32>
    %2 = arith.mulf %0, %1 : vector<1024x1xf32>
    %c0_1 = arith.constant 0 : index
    %c0_2 = arith.constant 0 : index
    %3 = vector.load %arg2[%c0_1, %c0_2] : memref<1x50xf32, #tpu.memory_space<vmem>>, vector<1x50xf32>
    %4 = vector.broadcast %2 : vector<1024x1xf32> to vector<1024x50xf32>
    %5 = vector.broadcast %3 : vector<1x50xf32> to vector<1024x50xf32>
    %6 = arith.subf %4, %5 : vector<1024x50xf32>
    %7 = arith.mulf %6, %6 : vector<1024x50xf32>
    %cst_3 = arith.constant 0.000000e+00 : f32
    %8 = vector.broadcast %cst_3 : f32 to vector<1024x50xf32>
    %9 = arith.subf %8, %7 : vector<1024x50xf32>
    %10 = math.exp %9 : vector<1024x50xf32>
    %c0_4 = arith.constant 0 : index
    %c0_5 = arith.constant 0 : index
    %11 = vector.load %arg3[%c0_4, %c0_5] : memref<1024x50xf32, #tpu.memory_space<vmem>>, vector<1024x50xf32>
    tpu.vector_store %arg3[%c0_4, %c0_5], %10 {strides = array<i32>} : memref<1024x50xf32, #tpu.memory_space<vmem>>, vector<1024x50xf32>,
    return
  }
  func.func @transform_0(%arg0: i32) -> (i32, i32) {
    %c0_i32 = arith.constant 0 : i32
    %c0_i32_0 = arith.constant 0 : i32
    return %arg0, %c0_i32 : i32, i32
  }
  func.func @transform_1(%arg0: i32) -> (i32, i32) {
    %c0_i32 = arith.constant 0 : i32
    %c0_i32_0 = arith.constant 0 : i32
    %c0_i32_1 = arith.constant 0 : i32
    return %c0_i32, %c0_i32_0 : i32, i32
  }
  func.func @transform_2(%arg0: i32) -> (i32, i32) {
    %c0_i32 = arith.constant 0 : i32
    %c0_i32_0 = arith.constant 0 : i32
    return %arg0, %c0_i32 : i32, i32
  }
}

</mosaic_0001>

<bundles_post_ra>
// kernel: tpu_custom_call.1
= control target key start
LH: loop header
LB: loop body
LE: loop exit
PB: predicated region body
PF: predicated region fallthrough
CT: control target
= control target key end

     0   :  { %s2785_s9 = smov 0   ;;  %s2787_s10 = smov 0   ;;  %s3560_s0 = inlined_call_operand.vmem [shape: f32[3000,1], index: 0, kind: input, shape index: {}]   ;;  %s3561_s1 = inlined_call_operand.vmem [shape: f32[1,50], index: 1, kind: input, shape index: {}]   ;;  %s3562_s2 = inlined_call_operand.vmem [shape: f32[3000,50], index: 2, kind: output, shape index: {}]  }
   0x1   :  { %s2789_s11 = smov 0  }
   0x2 LB: > { %s2798_s12 = sadd.s32 4294967295, %s2735_s11   ;;  %s2800_s13 = sadd.s32 1, %s2735_s11   ;;  %s2735_s11 = sphi %s2789_s11, %s3571_s11   ;;  %s2731_s10 = sphi %s2787_s10, %s3570_s10   ;;  %s2727_s9 = sphi %s2785_s9, %s3569_s9  }
   0x3   : > { %s63_s14 = ssub.s32 %s2735_s11, %s2800_s13  ;;  %s66_s15 = sadd.s32 1, %s2731_s10 }
   0x4   : > { %p64_p0 = scmp.eq.s32.totalorder %s63_s14, 0  ;;  %p76_p1 = scmp.ne.s32.totalorder %s2731_s10, %s2727_s9 }
   0x5   : > { %p77_p2 = scmp.eq.s32.totalorder %s2798_s12, 2  ;;  %p2307_p3 = scmp.ge.s32.totalorder %s2735_s11, 1 }
   0x6   : > { %s2808_s16 = scalar_select %p64_p0, %s2731_s10, %s66_s15  }
   0x7   : > { %p2810_p4 = por %p77_p2, %p76_p1  ;;  %p121_p5 = scmp.lt.s32.totalorder %s2735_s11, 4 }
   0x9   : > { %p122_p6 = pnand %p2307_p3, %p121_p5 }
   0xa   : > { %s2815_s18 = sshll.u32 (!%p122_p6), %s2798_s12, 7  ;;  %v2769_v0 = vmov (!%p122_p6), 0   ;;  %s143_s26 = sand.u32 (!%p122_p6), 1, %s2727_s9   ;;  %vm1708_vm0 = vcmask (!%p122_p6), 408576  }
   0xb   : > { %125 = sbr.rel (%p122_p6) target bundleno = 498 (0x1f2), region = 28  ;;  %2422 = vset.pattern.permute.xlu1 (!%p122_p6), %v2769_v0  ;;  %2421 = vset.pattern.permute.xlu0 (!%p122_p6), %v2769_v0  ;;  %p151_p7 = scmp.lt.s32.totalorder (!%p122_p6), %s2815_s18, 374 }
   0xc   : > { %s2308_s27 = sshll.u32 (!%p122_p6), %s143_s26, 10 }
   0xd   : > { %s2918_s28 = scalar_lea.vmem (!%p122_p6), [#allocation2], %s2308_s27  }
  0x12   : > { %s152_s19 = scalar_select %p151_p7, %s2815_s18, 374 }
  0x13   : > { %s1845_s5 = ssub.s32 (%p2810_p4), 375, %s2815_s18  ;;  %s2329_s6 = sshll.u32 (%p2810_p4), %s2798_s12, 10 }
  0x14   : > { %s2310_s20 = sshll.u32 %s152_s19, 3  ;;  %p1846_p8 = scmp.lt.s32.totalorder (%p2810_p4), %s1845_s5, 128 }
  0x15   : > { %s2822_s23 = scalar_lea.vmem %s3560_s0, %s2310_s20  ;;  %s3361_s9 = scalar_lea.vmem (%p2810_p4), %s3562_s2, %s2329_s6  }
  0x16   : > { %v167_v1 = vld [vmem:[%s2822_s23 + $0x10] sm:$0xff]  ;;  %v165_v2 = vld [vmem:[%s2822_s23] sm:$0xff]  ;;  %v168_v3 = vld [vmem:[%s2822_s23 + $0x18] sm:$0xff] }
  0x17   : > { %v295_v4 = vmul.f32 6.9296465, %v167_v1  ;;  %v293_v5 = vmul.f32 6.9296465, %v165_v2  ;;  %v166_v6 = vld [vmem:[%s2822_s23 + $0x8] sm:$0xff]  ;;  %v169_v10 = vld [vmem:[%s2822_s23 + $0x20] sm:$0xff] }
  0x18   : > { %v296_v7 = vmul.f32 6.9296465, %v168_v3  ;;  %v294_v8 = vmul.f32 6.9296465, %v166_v6  ;;  %v170_v9 = vld [vmem:[%s2822_s23 + $0x28] sm:$0xff]  ;;  %v172_v13 = vld [vmem:[%s2822_s23 + $0x38] sm:$0xff] }
  0x19   : > { %434 = vperm.xlu1 %2422, %v295_v4   ;;  %424 = vperm.xlu0 %2421, %v293_v5   ;;  %v298_v11 = vmul.f32 6.9296465, %v170_v9  ;;  %v297_v12 = vmul.f32 6.9296465, %v169_v10  ;;  %v171_v14 = vld [vmem:[%s2822_s23 + $0x30] sm:$0xff]  ;;  %v174_v17 = vld [vmem:[%s2822_s23 + $0x48] sm:$0xff] }
  0x1a   : > { %v300_v15 = vmul.f32 6.9296465, %v172_v13  ;;  %v299_v16 = vmul.f32 6.9296465, %v171_v14  ;;  %v173_v18 = vld [vmem:[%s2822_s23 + $0x40] sm:$0xff]  ;;  %v176_v21 = vld [vmem:[%s2822_s23 + $0x58] sm:$0xff] }
  0x1b   : > { %v302_v19 = vmul.f32 6.9296465, %v174_v17  ;;  %v301_v20 = vmul.f32 6.9296465, %v173_v18  ;;  %v175_v22 = vld [vmem:[%s2822_s23 + $0x50] sm:$0xff]  ;;  %v178_v25 = vld [vmem:[%s2822_s23 + $0x68] sm:$0xff] }
  0x1c   : > { %v304_v23 = vmul.f32 6.9296465, %v176_v21  ;;  %v303_v24 = vmul.f32 6.9296465, %v175_v22  ;;  %v177_v26 = vld [vmem:[%s2822_s23 + $0x60] sm:$0xff]  ;;  %v180_v29 = vld [vmem:[%s2822_s23 + $0x78] sm:$0xff] }
  0x1d   : > { %439 = vperm.xlu1 %2422, %v296_v7   ;;  %429 = vperm.xlu0 %2421, %v294_v8   ;;  %v306_v27 = vmul.f32 6.9296465, %v178_v25  ;;  %v305_v28 = vmul.f32 6.9296465, %v177_v26  ;;  %v179_v30 = vld [vmem:[%s2822_s23 + $0x70] sm:$0xff]  ;;  %v182_v33 = vld [vmem:[%s2822_s23 + $0x88] sm:$0xff] }
  0x1e   : > { %v308_v31 = vmul.f32 6.9296465, %v180_v29  ;;  %v307_v32 = vmul.f32 6.9296465, %v179_v30  ;;  %v181_v34 = vld [vmem:[%s2822_s23 + $0x80] sm:$0xff]  ;;  %v184_v37 = vld [vmem:[%s2822_s23 + $0x98] sm:$0xff] }
  0x1f   : > { %v310_v35 = vmul.f32 6.9296465, %v182_v33  ;;  %v309_v36 = vmul.f32 6.9296465, %v181_v34  ;;  %v183_v38 = vld [vmem:[%s2822_s23 + $0x90] sm:$0xff]  ;;  %v186_v41 = vld [vmem:[%s2822_s23 + $0xa8] sm:$0xff] }
  0x20   : > { %v312_v39 = vmul.f32 6.9296465, %v184_v37  ;;  %v311_v40 = vmul.f32 6.9296465, %v183_v38  ;;  %v185_v42 = vld [vmem:[%s2822_s23 + $0xa0] sm:$0xff]  ;;  %v188_v45 = vld [vmem:[%s2822_s23 + $0xb8] sm:$0xff] }
  0x21   : > { %449 = vperm.xlu1 %2422, %v298_v11   ;;  %444 = vperm.xlu0 %2421, %v297_v12   ;;  %v314_v43 = vmul.f32 6.9296465, %v186_v41  ;;  %v313_v44 = vmul.f32 6.9296465, %v185_v42  ;;  %v187_v46 = vld [vmem:[%s2822_s23 + $0xb0] sm:$0xff]  ;;  %v190_v49 = vld [vmem:[%s2822_s23 + $0xc8] sm:$0xff] }
  0x22   : > { %v316_v47 = vmul.f32 6.9296465, %v188_v45  ;;  %v315_v48 = vmul.f32 6.9296465, %v187_v46  ;;  %v189_v50 = vld [vmem:[%s2822_s23 + $0xc0] sm:$0xff]  ;;  %v192_v53 = vld [vmem:[%s2822_s23 + $0xd8] sm:$0xff] }
  0x23   : > { %v318_v51 = vmul.f32 6.9296465, %v190_v49  ;;  %v317_v52 = vmul.f32 6.9296465, %v189_v50  ;;  %v191_v54 = vld [vmem:[%s2822_s23 + $0xd0] sm:$0xff]  ;;  %v194_v57 = vld [vmem:[%s2822_s23 + $0xe8] sm:$0xff] }
  0x24   : > { %v320_v55 = vmul.f32 6.9296465, %v192_v53  ;;  %v319_v56 = vmul.f32 6.9296465, %v191_v54  ;;  %v193_v58 = vld [vmem:[%s2822_s23 + $0xe0] sm:$0xff]  ;;  %v196_v61 = vld [vmem:[%s2822_s23 + $0xf8] sm:$0xff] }
  0x25   : > { %459 = vperm.xlu1 %2422, %v300_v15   ;;  %454 = vperm.xlu0 %2421, %v299_v16   ;;  %v322_v59 = vmul.f32 6.9296465, %v194_v57  ;;  %v321_v60 = vmul.f32 6.9296465, %v193_v58  ;;  %v195_v62 = vld [vmem:[%s2822_s23 + $0xf0] sm:$0xff]  ;;  %v198_v1 = vld [vmem:[%s2822_s23 + $0x108] sm:$0xff] }
  0x26   : > { %v324_v63 = vmul.f32 6.9296465, %v196_v61  ;;  %v323_v0 = vmul.f32 6.9296465, %v195_v62  ;;  %v197_v2 = vld [vmem:[%s2822_s23 + $0x100] sm:$0xff]  ;;  %v200_v5 = vld [vmem:[%s2822_s23 + $0x118] sm:$0xff] }
  0x27   : > { %v326_v3 = vmul.f32 6.9296465, %v198_v1  ;;  %v325_v4 = vmul.f32 6.9296465, %v197_v2  ;;  %v199_v6 = vld [vmem:[%s2822_s23 + $0x110] sm:$0xff]  ;;  %v202_v9 = vld [vmem:[%s2822_s23 + $0x128] sm:$0xff] }
  0x28   : > { %v328_v7 = vmul.f32 6.9296465, %v200_v5  ;;  %v327_v8 = vmul.f32 6.9296465, %v199_v6  ;;  %v201_v10 = vld [vmem:[%s2822_s23 + $0x120] sm:$0xff]  ;;  %v204_v13 = vld [vmem:[%s2822_s23 + $0x138] sm:$0xff] }
  0x29   : > { %469 = vperm.xlu1 %2422, %v302_v19   ;;  %464 = vperm.xlu0 %2421, %v301_v20   ;;  %v330_v11 = vmul.f32 6.9296465, %v202_v9  ;;  %v329_v12 = vmul.f32 6.9296465, %v201_v10  ;;  %v203_v14 = vld [vmem:[%s2822_s23 + $0x130] sm:$0xff]  ;;  %v206_v17 = vld [vmem:[%s2822_s23 + $0x148] sm:$0xff] }
  0x2a   : > { %v332_v15 = vmul.f32 6.9296465, %v204_v13  ;;  %v331_v16 = vmul.f32 6.9296465, %v203_v14  ;;  %v205_v18 = vld [vmem:[%s2822_s23 + $0x140] sm:$0xff]  ;;  %v208_v21 = vld [vmem:[%s2822_s23 + $0x158] sm:$0xff] }
  0x2b   : > { %v334_v19 = vmul.f32 6.9296465, %v206_v17  ;;  %v333_v20 = vmul.f32 6.9296465, %v205_v18  ;;  %v207_v22 = vld [vmem:[%s2822_s23 + $0x150] sm:$0xff]  ;;  %v210_v25 = vld [vmem:[%s2822_s23 + $0x168] sm:$0xff] }
  0x2c   : > { %v209_v26 = vld [vmem:[%s2822_s23 + $0x160] sm:$0xff]  ;;  %v212_v29 = vld [vmem:[%s2822_s23 + $0x178] sm:$0xff]  ;;  %v211_v30 = vld [vmem:[%s2822_s23 + $0x170] sm:$0xff] }
  0x2d   : > { %479 = vperm.xlu1 %2422, %v304_v23   ;;  %474 = vperm.xlu0 %2421, %v303_v24   ;;  %v336_v23 = vmul.f32 6.9296465, %v208_v21  ;;  %v335_v24 = vmul.f32 6.9296465, %v207_v22  ;;  %v214_v33 = vld [vmem:[%s2822_s23 + $0x188] sm:$0xff]  ;;  %v213_v34 = vld [vmem:[%s2822_s23 + $0x180] sm:$0xff] }
  0x2e   : > { %v216_v37 = vld [vmem:[%s2822_s23 + $0x198] sm:$0xff]  ;;  %v215_v38 = vld [vmem:[%s2822_s23 + $0x190] sm:$0xff]  ;;  %v218_v41 = vld [vmem:[%s2822_s23 + $0x1a8] sm:$0xff] }
  0x2f   : > { %v217_v42 = vld [vmem:[%s2822_s23 + $0x1a0] sm:$0xff]  ;;  %v220_v45 = vld [vmem:[%s2822_s23 + $0x1b8] sm:$0xff]  ;;  %v219_v46 = vld [vmem:[%s2822_s23 + $0x1b0] sm:$0xff] }
  0x30   : > { %v222_v49 = vld [vmem:[%s2822_s23 + $0x1c8] sm:$0xff]  ;;  %v221_v50 = vld [vmem:[%s2822_s23 + $0x1c0] sm:$0xff]  ;;  %v224_v53 = vld [vmem:[%s2822_s23 + $0x1d8] sm:$0xff] }
  0x31   : > { %489 = vperm.xlu1 %2422, %v306_v27   ;;  %484 = vperm.xlu0 %2421, %v305_v28   ;;  %v338_v27 = vmul.f32 6.9296465, %v210_v25  ;;  %v337_v28 = vmul.f32 6.9296465, %v209_v26  ;;  %v223_v54 = vld [vmem:[%s2822_s23 + $0x1d0] sm:$0xff]  ;;  %v226_v57 = vld [vmem:[%s2822_s23 + $0x1e8] sm:$0xff] }
  0x32   : > { %v225_v58 = vld [vmem:[%s2822_s23 + $0x1e0] sm:$0xff]  ;;  %v228_v61 = vld [vmem:[%s2822_s23 + $0x1f8] sm:$0xff]  ;;  %v227_v62 = vld [vmem:[%s2822_s23 + $0x1f0] sm:$0xff] }
  0x33   : > { %v230_v1 = vld [vmem:[%s2822_s23 + $0x208] sm:$0xff]  ;;  %v229_v2 = vld [vmem:[%s2822_s23 + $0x200] sm:$0xff]  ;;  %v232_v6 = vld [vmem:[%s2822_s23 + $0x218] sm:$0xff] }
  0x34   : > { %v2893_v5 = vld [vmem:[%s3561_s1] ss:$0 sm:$0xff]  ;;  %v234_v14 = vld [vmem:[%s2822_s23 + $0x228] sm:$0xff]  ;;  %v236_v26 = vld [vmem:[%s2822_s23 + $0x238] sm:$0xff] }
  0x35   : > { %499 = vperm.xlu1 %2422, %v308_v31   ;;  %494 = vperm.xlu0 %2421, %v307_v32   ;;  %v340_v31 = vmul.f32 6.9296465, %v212_v29  ;;  %v339_v32 = vmul.f32 6.9296465, %v211_v30 }
  0x39   : > { %509 = vperm.xlu1 %2422, %v310_v35   ;;  %504 = vperm.xlu0 %2421, %v309_v36   ;;  %v342_v35 = vmul.f32 6.9296465, %v214_v33  ;;  %v341_v36 = vmul.f32 6.9296465, %v213_v34  ;;  %v364_v34 = vmul.f32 6.9296465, %v236_v26 }
  0x3d   : > { %519 = vperm.xlu1 %2422, %v312_v39   ;;  %514 = vperm.xlu0 %2421, %v311_v40   ;;  %v344_v39 = vmul.f32 6.9296465, %v216_v37  ;;  %v343_v40 = vmul.f32 6.9296465, %v215_v38 }
  0x41   : > { %529 = vperm.xlu1 %2422, %v314_v43   ;;  %524 = vperm.xlu0 %2421, %v313_v44   ;;  %v346_v43 = vmul.f32 6.9296465, %v218_v41  ;;  %v345_v44 = vmul.f32 6.9296465, %v217_v42 }
  0x45   : > { %539 = vperm.xlu1 %2422, %v316_v47   ;;  %534 = vperm.xlu0 %2421, %v315_v48   ;;  %v348_v47 = vmul.f32 6.9296465, %v220_v45  ;;  %v347_v48 = vmul.f32 6.9296465, %v219_v46 }
  0x49   : > { %549 = vperm.xlu1 %2422, %v318_v51   ;;  %544 = vperm.xlu0 %2421, %v317_v52   ;;  %v350_v51 = vmul.f32 6.9296465, %v222_v49  ;;  %v349_v52 = vmul.f32 6.9296465, %v221_v50 }
  0x4d   : > { %559 = vperm.xlu1 %2422, %v320_v55   ;;  %554 = vperm.xlu0 %2421, %v319_v56   ;;  %v352_v55 = vmul.f32 6.9296465, %v224_v53  ;;  %v351_v56 = vmul.f32 6.9296465, %v223_v54  ;;  %v240_v53 = vld [vmem:[%s2822_s23 + $0x258] sm:$0xff]  ;;  %v239_v54 = vld [vmem:[%s2822_s23 + $0x250] sm:$0xff] }
  0x51   : > { %569 = vperm.xlu1 %2422, %v322_v59   ;;  %564 = vperm.xlu0 %2421, %v321_v60   ;;  %v354_v59 = vmul.f32 6.9296465, %v226_v57  ;;  %v353_v60 = vmul.f32 6.9296465, %v225_v58 }
  0x55   : > { %579 = vperm.xlu1 %2422, %v324_v63   ;;  %574 = vperm.xlu0 %2421, %v323_v0   ;;  %v356_v63 = vmul.f32 6.9296465, %v228_v61  ;;  %v355_v0 = vmul.f32 6.9296465, %v227_v62  ;;  %v368_v62 = vmul.f32 6.9296465, %v240_v53 }
  0x56   : > { %v247_v53 = vld [vmem:[%s2822_s23 + $0x290] sm:$0xff] }
  0x59   : > { %589 = vperm.xlu1 %2422, %v326_v3   ;;  %584 = vperm.xlu0 %2421, %v325_v4   ;;  %v358_v3 = vmul.f32 6.9296465, %v230_v1  ;;  %v357_v4 = vmul.f32 6.9296465, %v229_v2 }
  0x5d   : > { %599 = vperm.xlu1 %2422, %v328_v7   ;;  %594 = vperm.xlu0 %2421, %v327_v8   ;;  %v231_v7 = vld [vmem:[%s2822_s23 + $0x210] sm:$0xff] }
  0x5e   : > { %v359_v13 = vmul.f32 6.9296465, %v231_v7 }
  0x61   : > { %609 = vperm.xlu1 %2422, %v330_v11   ;;  %604 = vperm.xlu0 %2421, %v329_v12   ;;  %v360_v12 = vmul.f32 6.9296465, %v232_v6 }
  0x65   : > { %619 = vperm.xlu1 %2422, %v332_v15   ;;  %614 = vperm.xlu0 %2421, %v331_v16   ;;  %v233_v15 = vld [vmem:[%s2822_s23 + $0x220] sm:$0xff] }
  0x66   : > { %v361_v21 = vmul.f32 6.9296465, %v233_v15 }
  0x69   : > { %629 = vperm.xlu1 %2422, %v334_v19   ;;  %624 = vperm.xlu0 %2421, %v333_v20   ;;  %v362_v20 = vmul.f32 6.9296465, %v234_v14 }
  0x6d   : > { %639 = vperm.xlu1 %2422, %v336_v23   ;;  %634 = vperm.xlu0 %2421, %v335_v24  }
  0x71   : > { %649 = vperm.xlu1 %2422, %v338_v27   ;;  %644 = vperm.xlu0 %2421, %v337_v28   ;;  %v235_v27 = vld [vmem:[%s2822_s23 + $0x230] sm:$0xff] }
  0x75   : > { %659 = vperm.xlu1 %2422, %v340_v31   ;;  %654 = vperm.xlu0 %2421, %v339_v32  }
  0x79   : > { %669 = vperm.xlu1 %2422, %v342_v35   ;;  %664 = vperm.xlu0 %2421, %v341_v36   ;;  %v363_v35 = vmul.f32 6.9296465, %v235_v27 }
  0x7d   : > { %679 = vperm.xlu1 %2422, %v344_v39   ;;  %674 = vperm.xlu0 %2421, %v343_v40   ;;  %v238_v39 = vld [vmem:[%s2822_s23 + $0x248] sm:$0xff]  ;;  %v237_v40 = vld [vmem:[%s2822_s23 + $0x240] sm:$0xff] }
  0x7e   : > { %v365_v49 = vmul.f32 6.9296465, %v237_v40 }
  0x81   : > { %689 = vperm.xlu1 %2422, %v346_v43   ;;  %684 = vperm.xlu0 %2421, %v345_v44  }
  0x85   : > { %699 = vperm.xlu1 %2422, %v348_v47   ;;  %694 = vperm.xlu0 %2421, %v347_v48   ;;  %v366_v48 = vmul.f32 6.9296465, %v238_v39 }
  0x89   : > { %709 = vperm.xlu1 %2422, %v350_v51   ;;  %704 = vperm.xlu0 %2421, %v349_v52  }
  0x8d   : > { %719 = vperm.xlu1 %2422, %v352_v55   ;;  %714 = vperm.xlu0 %2421, %v351_v56  }
  0x91   : > { %729 = vperm.xlu1 %2422, %v354_v59   ;;  %724 = vperm.xlu0 %2421, %v353_v60  }
  0x95   : > { %739 = vperm.xlu1 %2422, %v356_v63   ;;  %734 = vperm.xlu0 %2421, %v355_v0   ;;  %v367_v63 = vmul.f32 6.9296465, %v239_v54 }
  0x98   : > { %v435_v8 = vpop.permute.xlu1 %434  ;;  %v425_v9 = vpop.permute.xlu0 %424 }
  0x99   : > { %v1070_v10 = vsub.f32 %v435_v8, %v2893_v5  ;;  %v1068_v11 = vsub.f32 %v425_v9, %v2893_v5  ;;  %749 = vperm.xlu1 %2422, %v358_v3   ;;  %744 = vperm.xlu0 %2421, %v357_v4   ;;  %v242_v3 = vld [vmem:[%s2822_s23 + $0x268] sm:$0xff]  ;;  %v241_v4 = vld [vmem:[%s2822_s23 + $0x260] sm:$0xff] }
  0x9a   : > { %v370_v15 = vmul.f32 6.9296465, %v242_v3 }
  0x9b   : > { %v1198_v16 = vmul.f32 %v1070_v10, %v1070_v10  ;;  %v1196_v17 = vmul.f32 %v1068_v11, %v1068_v11 }
  0x9c   : > { %v440_v18 = vpop.permute.xlu1 %439  ;;  %v430_v19 = vpop.permute.xlu0 %429 }
  0x9d   : > { %v1326_v22 = vsub.f32 0.0, %v1198_v16  ;;  %v1324_v23 = vsub.f32 0.0, %v1196_v17  ;;  %v1071_v24 = vsub.f32 %v440_v18, %v2893_v5  ;;  %v1069_v25 = vsub.f32 %v430_v19, %v2893_v5  ;;  %759 = vperm.xlu1 %2422, %v360_v12   ;;  %754 = vperm.xlu0 %2421, %v359_v13  }
  0x9e   : > { %v369_v16 = vmul.f32 6.9296465, %v241_v4  ;;  %v250_v4 = vld [vmem:[%s2822_s23 + $0x2a8] sm:$0xff] }
  0x9f   : > { %v1456_v28 = vmul.f32 1.442695, %v1326_v22  ;;  %v1452_v29 = vmul.f32 1.442695, %v1324_v23  ;;  %v1199_v30 = vmul.f32 %v1071_v24, %v1071_v24  ;;  %v1197_v31 = vmul.f32 %v1069_v25, %v1069_v25 }
  0xa0   : > { %v450_v32 = vpop.permute.xlu1 %449  ;;  %v445_v33 = vpop.permute.xlu0 %444 }
  0xa1   : > { %2423 = vpow2.f32 %v1456_v28  ;;  %v1327_v36 = vsub.f32 0.0, %v1199_v30  ;;  %v1325_v37 = vsub.f32 0.0, %v1197_v31  ;;  %v1073_v38 = vsub.f32 %v450_v32, %v2893_v5  ;;  %769 = vperm.xlu1 %2422, %v362_v20   ;;  %764 = vperm.xlu0 %2421, %v361_v21   ;;  %v244_v20 = vld [vmem:[%s2822_s23 + $0x278] sm:$0xff]  ;;  %v243_v21 = vld [vmem:[%s2822_s23 + $0x270] sm:$0xff] }
  0xa2   : > { %2425 = vpow2.f32 %v1452_v29  ;;  %v1072_v41 = vsub.f32 %v445_v33, %v2893_v5  ;;  %v372_v31 = vmul.f32 6.9296465, %v244_v20  ;;  %v371_v32 = vmul.f32 6.9296465, %v243_v21  ;;  %v252_v21 = vld [vmem:[%s2822_s23 + $0x2b8] sm:$0xff] }
  0xa3   : > { %v1458_v42 = vmul.f32 1.442695, %v1327_v36  ;;  %v1454_v43 = vmul.f32 1.442695, %v1325_v37  ;;  %v1201_v44 = vmul.f32 %v1073_v38, %v1073_v38  ;;  %v246_v36 = vld [vmem:[%s2822_s23 + $0x288] sm:$0xff]  ;;  %v245_v37 = vld [vmem:[%s2822_s23 + $0x280] sm:$0xff] }
  0xa4   : > { %v1200_v45 = vmul.f32 %v1072_v41, %v1072_v41  ;;  %v460_v46 = vpop.permute.xlu1 %459  ;;  %v455_v47 = vpop.permute.xlu0 %454 }
  0xa5   : > { %2427 = vpow2.f32 %v1458_v42  ;;  %v1329_v50 = vsub.f32 0.0, %v1201_v44  ;;  %v1075_v51 = vsub.f32 %v460_v46, %v2893_v5  ;;  %v1074_v52 = vsub.f32 %v455_v47, %v2893_v5  ;;  %779 = vperm.xlu1 %2422, %v364_v34   ;;  %774 = vperm.xlu0 %2421, %v363_v35  }
  0xa6   : > { %2429 = vpow2.f32 %v1454_v43  ;;  %v1328_v55 = vsub.f32 0.0, %v1200_v45  ;;  %v374_v47 = vmul.f32 6.9296465, %v246_v36 }
  0xa7   : > { %v1462_v56 = vmul.f32 1.442695, %v1329_v50  ;;  %v1203_v57 = vmul.f32 %v1075_v51, %v1075_v51  ;;  %v1202_v58 = vmul.f32 %v1074_v52, %v1074_v52  ;;  %v248_v52 = vld [vmem:[%s2822_s23 + $0x298] sm:$0xff] }
  0xa8   : > { %v1460_v59 = vmul.f32 1.442695, %v1328_v55  ;;  %v470_v60 = vpop.permute.xlu1 %469  ;;  %v465_v61 = vpop.permute.xlu0 %464 }
  0xa9   : > { %2431 = vpow2.f32 %v1462_v56  ;;  %v1331_v0 = vsub.f32 0.0, %v1203_v57  ;;  %v1330_v1 = vsub.f32 0.0, %v1202_v58  ;;  %v1077_v2 = vsub.f32 %v470_v60, %v2893_v5  ;;  %789 = vperm.xlu1 %2422, %v366_v48   ;;  %784 = vperm.xlu0 %2421, %v365_v49  }
  0xaa   : > { %2433 = vpow2.f32 %v1460_v59  ;;  %v1076_v6 = vsub.f32 %v465_v61, %v2893_v5  ;;  %v373_v48 = vmul.f32 6.9296465, %v245_v37  ;;  %v254_v37 = vld [vmem:[%s2822_s23 + $0x2c8] sm:$0xff] }
  0xab   : > { %v2424_v7 = vpop.eup %2423  ;;  %v1466_v8 = vmul.f32 1.442695, %v1331_v0  ;;  %v1464_v9 = vmul.f32 1.442695, %v1330_v1  ;;  %v1205_v10 = vmul.f32 %v1077_v2, %v1077_v2  ;;  %v375_v0 = vmul.f32 6.9296465, %v247_v53 }
  0xac   : > { %v2426_v11 = vpop.eup %2425  ;;  %1711 = vst.msk [vmem:[%s2918_s28 + $0x10] sm:$0xff] %vm1708_vm0, %v2424_v7  ;;  %v1204_v12 = vmul.f32 %v1076_v6, %v1076_v6  ;;  %v480_v13 = vpop.permute.xlu1 %479  ;;  %v249_v6 = vld [vmem:[%s2822_s23 + $0x2a0] sm:$0xff]  ;;  %v256_v53 = vld [vmem:[%s2822_s23 + $0x2d8] sm:$0xff] }
  0xad   : > { %v475_v14 = vpop.permute.xlu0 %474  ;;  %1709 = vst.msk [vmem:[%s2918_s28] sm:$0xff] %vm1708_vm0, %v2426_v11  ;;  %2435 = vpow2.f32 %v1466_v8  ;;  %v1333_v17 = vsub.f32 0.0, %v1205_v10  ;;  %v1079_v18 = vsub.f32 %v480_v13, %v2893_v5  ;;  %799 = vperm.xlu1 %2422, %v368_v62   ;;  %794 = vperm.xlu0 %2421, %v367_v63   ;;  %v376_v63 = vmul.f32 6.9296465, %v248_v52 }
  0xae   : > { %v1078_v19 = vsub.f32 %v475_v14, %v2893_v5  ;;  %2437 = vpow2.f32 %v1464_v9  ;;  %v1332_v22 = vsub.f32 0.0, %v1204_v12 }
  0xaf   : > { %v2428_v23 = vpop.eup %2427  ;;  %v1470_v24 = vmul.f32 1.442695, %v1333_v17  ;;  %v1207_v25 = vmul.f32 %v1079_v18, %v1079_v18  ;;  %v377_v17 = vmul.f32 6.9296465, %v249_v6  ;;  %v258_v6 = vld [vmem:[%s2822_s23 + $0x2e8] sm:$0xff] }
  0xb0   : > { %v1206_v26 = vmul.f32 %v1078_v19, %v1078_v19  ;;  %v2430_v27 = vpop.eup %2429  ;;  %1712 = vst.msk [vmem:[%s2918_s28 + $0x18] sm:$0xff] %vm1708_vm0, %v2428_v23  ;;  %v1468_v28 = vmul.f32 1.442695, %v1332_v22  ;;  %v490_v29 = vpop.permute.xlu1 %489  ;;  %v251_v22 = vld [vmem:[%s2822_s23 + $0x2b0] sm:$0xff] }
  0xb1   : > { %v485_v30 = vpop.permute.xlu0 %484  ;;  %1710 = vst.msk [vmem:[%s2918_s28 + $0x8] sm:$0xff] %vm1708_vm0, %v2430_v27  ;;  %2439 = vpow2.f32 %v1470_v24  ;;  %v1335_v33 = vsub.f32 0.0, %v1207_v25  ;;  %v1081_v35 = vsub.f32 %v490_v29, %v2893_v5  ;;  %809 = vperm.xlu1 %2422, %v370_v15   ;;  %804 = vperm.xlu0 %2421, %v369_v16   ;;  %v378_v16 = vmul.f32 6.9296465, %v250_v4 }
  0xb2   : > { %v1334_v34 = vsub.f32 0.0, %v1206_v26  ;;  %2441 = vpow2.f32 %v1468_v28  ;;  %v1080_v38 = vsub.f32 %v485_v30, %v2893_v5 }
  0xb3   : > { %v2432_v39 = vpop.eup %2431  ;;  %v1474_v40 = vmul.f32 1.442695, %v1335_v33  ;;  %v1209_v42 = vmul.f32 %v1081_v35, %v1081_v35  ;;  %v379_v33 = vmul.f32 6.9296465, %v251_v22  ;;  %v260_v22 = vld [vmem:[%s2822_s23 + $0x2f8] sm:$0xff] }
  0xb4   : > { %v1472_v41 = vmul.f32 1.442695, %v1334_v34  ;;  %v2434_v43 = vpop.eup %2433  ;;  %1714 = vst.msk [vmem:[%s2918_s28 + $0x28] sm:$0xff] %vm1708_vm0, %v2432_v39  ;;  %v1208_v44 = vmul.f32 %v1080_v38, %v1080_v38  ;;  %v500_v45 = vpop.permute.xlu1 %499  ;;  %v253_v38 = vld [vmem:[%s2822_s23 + $0x2c0] sm:$0xff] }
  0xb5   : > { %v495_v46 = vpop.permute.xlu0 %494  ;;  %1713 = vst.msk [vmem:[%s2918_s28 + $0x20] sm:$0xff] %vm1708_vm0, %v2434_v43  ;;  %2443 = vpow2.f32 %v1474_v40  ;;  %v1337_v49 = vsub.f32 0.0, %v1209_v42  ;;  %v1083_v50 = vsub.f32 %v500_v45, %v2893_v5  ;;  %819 = vperm.xlu1 %2422, %v372_v31   ;;  %814 = vperm.xlu0 %2421, %v371_v32   ;;  %v380_v32 = vmul.f32 6.9296465, %v252_v21 }
  0xb6   : > { %v1082_v51 = vsub.f32 %v495_v46, %v2893_v5  ;;  %2445 = vpow2.f32 %v1472_v41  ;;  %v1336_v54 = vsub.f32 0.0, %v1208_v44 }
  0xb7   : > { %v2436_v55 = vpop.eup %2435  ;;  %v1478_v56 = vmul.f32 1.442695, %v1337_v49  ;;  %v1211_v57 = vmul.f32 %v1083_v50, %v1083_v50  ;;  %v381_v49 = vmul.f32 6.9296465, %v253_v38  ;;  %v262_v38 = vld [vmem:[%s2822_s23 + $0x308] sm:$0xff] }
  0xb8   : > { %v1210_v58 = vmul.f32 %v1082_v51, %v1082_v51  ;;  %v2438_v59 = vpop.eup %2437  ;;  %1716 = vst.msk [vmem:[%s2918_s28 + $0x38] sm:$0xff] %vm1708_vm0, %v2436_v55  ;;  %v1476_v60 = vmul.f32 1.442695, %v1336_v54  ;;  %v510_v61 = vpop.permute.xlu1 %509  ;;  %v255_v54 = vld [vmem:[%s2822_s23 + $0x2d0] sm:$0xff] }
  0xb9   : > { %v505_v62 = vpop.permute.xlu0 %504  ;;  %1715 = vst.msk [vmem:[%s2918_s28 + $0x30] sm:$0xff] %vm1708_vm0, %v2438_v59  ;;  %2447 = vpow2.f32 %v1478_v56  ;;  %v1339_v1 = vsub.f32 0.0, %v1211_v57  ;;  %v1085_v3 = vsub.f32 %v510_v61, %v2893_v5  ;;  %829 = vperm.xlu1 %2422, %v374_v47   ;;  %824 = vperm.xlu0 %2421, %v373_v48   ;;  %v382_v48 = vmul.f32 6.9296465, %v254_v37 }
  0xba   : > { %v1338_v2 = vsub.f32 0.0, %v1210_v58  ;;  %2449 = vpow2.f32 %v1476_v60  ;;  %v1084_v7 = vsub.f32 %v505_v62, %v2893_v5 }
  0xbb   : > { %v2440_v8 = vpop.eup %2439  ;;  %v1482_v9 = vmul.f32 1.442695, %v1339_v1  ;;  %v1213_v11 = vmul.f32 %v1085_v3, %v1085_v3  ;;  %v383_v1 = vmul.f32 6.9296465, %v255_v54  ;;  %v264_v54 = vld [vmem:[%s2822_s23 + $0x318] sm:$0xff] }
  0xbc   : > { %v1480_v10 = vmul.f32 1.442695, %v1338_v2  ;;  %v2442_v12 = vpop.eup %2441  ;;  %1718 = vst.msk [vmem:[%s2918_s28 + $0x48] sm:$0xff] %vm1708_vm0, %v2440_v8  ;;  %v1212_v13 = vmul.f32 %v1084_v7, %v1084_v7  ;;  %v520_v14 = vpop.permute.xlu1 %519  ;;  %v257_v7 = vld [vmem:[%s2822_s23 + $0x2e0] sm:$0xff] }
  0xbd   : > { %v515_v15 = vpop.permute.xlu0 %514  ;;  %1717 = vst.msk [vmem:[%s2918_s28 + $0x40] sm:$0xff] %vm1708_vm0, %v2442_v12  ;;  %2451 = vpow2.f32 %v1482_v9  ;;  %v1341_v18 = vsub.f32 0.0, %v1213_v11  ;;  %v1087_v19 = vsub.f32 %v520_v14, %v2893_v5  ;;  %839 = vperm.xlu1 %2422, %v376_v63   ;;  %834 = vperm.xlu0 %2421, %v375_v0   ;;  %v384_v0 = vmul.f32 6.9296465, %v256_v53 }
  0xbe   : > { %v1086_v20 = vsub.f32 %v515_v15, %v2893_v5  ;;  %2453 = vpow2.f32 %v1480_v10  ;;  %v1340_v23 = vsub.f32 0.0, %v1212_v13 }
  0xbf   : > { %v2444_v24 = vpop.eup %2443  ;;  %v1486_v25 = vmul.f32 1.442695, %v1341_v18  ;;  %v1215_v26 = vmul.f32 %v1087_v19, %v1087_v19  ;;  %v385_v18 = vmul.f32 6.9296465, %v257_v7  ;;  %v266_v7 = vld [vmem:[%s2822_s23 + $0x328] sm:$0xff] }
  0xc0   : > { %v1214_v27 = vmul.f32 %v1086_v20, %v1086_v20  ;;  %v2446_v28 = vpop.eup %2445  ;;  %1720 = vst.msk [vmem:[%s2918_s28 + $0x58] sm:$0xff] %vm1708_vm0, %v2444_v24  ;;  %v1484_v29 = vmul.f32 1.442695, %v1340_v23  ;;  %v530_v30 = vpop.permute.xlu1 %529  ;;  %v259_v23 = vld [vmem:[%s2822_s23 + $0x2f0] sm:$0xff] }
  0xc1   : > { %v525_v31 = vpop.permute.xlu0 %524  ;;  %1719 = vst.msk [vmem:[%s2918_s28 + $0x50] sm:$0xff] %vm1708_vm0, %v2446_v28  ;;  %2455 = vpow2.f32 %v1486_v25  ;;  %v1343_v34 = vsub.f32 0.0, %v1215_v26  ;;  %v1089_v36 = vsub.f32 %v530_v30, %v2893_v5  ;;  %849 = vperm.xlu1 %2422, %v378_v16   ;;  %844 = vperm.xlu0 %2421, %v377_v17   ;;  %v386_v17 = vmul.f32 6.9296465, %v258_v6 }
  0xc2   : > { %v1342_v35 = vsub.f32 0.0, %v1214_v27  ;;  %2457 = vpow2.f32 %v1484_v29  ;;  %v1088_v39 = vsub.f32 %v525_v31, %v2893_v5 }
  0xc3   : > { %v2448_v40 = vpop.eup %2447  ;;  %v1490_v41 = vmul.f32 1.442695, %v1343_v34  ;;  %v1217_v43 = vmul.f32 %v1089_v36, %v1089_v36  ;;  %v387_v34 = vmul.f32 6.9296465, %v259_v23  ;;  %v268_v23 = vld [vmem:[%s2822_s23 + $0x338] sm:$0xff] }
  0xc4   : > { %v1488_v42 = vmul.f32 1.442695, %v1342_v35  ;;  %v2450_v44 = vpop.eup %2449  ;;  %1722 = vst.msk [vmem:[%s2918_s28 + $0x68] sm:$0xff] %vm1708_vm0, %v2448_v40  ;;  %v1216_v45 = vmul.f32 %v1088_v39, %v1088_v39  ;;  %v540_v46 = vpop.permute.xlu1 %539  ;;  %v261_v39 = vld [vmem:[%s2822_s23 + $0x300] sm:$0xff] }
  0xc5   : > { %v535_v47 = vpop.permute.xlu0 %534  ;;  %1721 = vst.msk [vmem:[%s2918_s28 + $0x60] sm:$0xff] %vm1708_vm0, %v2450_v44  ;;  %2459 = vpow2.f32 %v1490_v41  ;;  %v1345_v50 = vsub.f32 0.0, %v1217_v43  ;;  %v1091_v51 = vsub.f32 %v540_v46, %v2893_v5  ;;  %859 = vperm.xlu1 %2422, %v380_v32   ;;  %854 = vperm.xlu0 %2421, %v379_v33   ;;  %v388_v33 = vmul.f32 6.9296465, %v260_v22 }
  0xc6   : > { %v1090_v52 = vsub.f32 %v535_v47, %v2893_v5  ;;  %2461 = vpow2.f32 %v1488_v42  ;;  %v1344_v55 = vsub.f32 0.0, %v1216_v45 }
  0xc7   : > { %v2452_v56 = vpop.eup %2451  ;;  %v1494_v57 = vmul.f32 1.442695, %v1345_v50  ;;  %v1219_v58 = vmul.f32 %v1091_v51, %v1091_v51  ;;  %v389_v50 = vmul.f32 6.9296465, %v261_v39  ;;  %v270_v39 = vld [vmem:[%s2822_s23 + $0x348] sm:$0xff] }
  0xc8   : > { %v1218_v59 = vmul.f32 %v1090_v52, %v1090_v52  ;;  %v2454_v60 = vpop.eup %2453  ;;  %1724 = vst.msk [vmem:[%s2918_s28 + $0x78] sm:$0xff] %vm1708_vm0, %v2452_v56  ;;  %v1492_v61 = vmul.f32 1.442695, %v1344_v55  ;;  %v550_v62 = vpop.permute.xlu1 %549  ;;  %v263_v55 = vld [vmem:[%s2822_s23 + $0x310] sm:$0xff] }
  0xc9   : > { %v545_v63 = vpop.permute.xlu0 %544  ;;  %1723 = vst.msk [vmem:[%s2918_s28 + $0x70] sm:$0xff] %vm1708_vm0, %v2454_v60  ;;  %2463 = vpow2.f32 %v1494_v57  ;;  %v1347_v2 = vsub.f32 0.0, %v1219_v58  ;;  %v1093_v4 = vsub.f32 %v550_v62, %v2893_v5  ;;  %869 = vperm.xlu1 %2422, %v382_v48   ;;  %864 = vperm.xlu0 %2421, %v381_v49   ;;  %v390_v49 = vmul.f32 6.9296465, %v262_v38 }
  0xca   : > { %v1346_v3 = vsub.f32 0.0, %v1218_v59  ;;  %2465 = vpow2.f32 %v1492_v61  ;;  %v1092_v8 = vsub.f32 %v545_v63, %v2893_v5 }
  0xcb   : > { %v2456_v9 = vpop.eup %2455  ;;  %v1498_v10 = vmul.f32 1.442695, %v1347_v2  ;;  %v1221_v12 = vmul.f32 %v1093_v4, %v1093_v4  ;;  %v391_v2 = vmul.f32 6.9296465, %v263_v55  ;;  %v272_v55 = vld [vmem:[%s2822_s23 + $0x358] sm:$0xff] }
  0xcc   : > { %v1496_v11 = vmul.f32 1.442695, %v1346_v3  ;;  %v2458_v13 = vpop.eup %2457  ;;  %1726 = vst.msk [vmem:[%s2918_s28 + $0x88] sm:$0xff] %vm1708_vm0, %v2456_v9  ;;  %v1220_v14 = vmul.f32 %v1092_v8, %v1092_v8  ;;  %v560_v15 = vpop.permute.xlu1 %559  ;;  %v265_v8 = vld [vmem:[%s2822_s23 + $0x320] sm:$0xff] }
  0xcd   : > { %v555_v16 = vpop.permute.xlu0 %554  ;;  %1725 = vst.msk [vmem:[%s2918_s28 + $0x80] sm:$0xff] %vm1708_vm0, %v2458_v13  ;;  %2467 = vpow2.f32 %v1498_v10  ;;  %v1349_v19 = vsub.f32 0.0, %v1221_v12  ;;  %v1095_v20 = vsub.f32 %v560_v15, %v2893_v5  ;;  %879 = vperm.xlu1 %2422, %v384_v0   ;;  %874 = vperm.xlu0 %2421, %v383_v1   ;;  %v392_v1 = vmul.f32 6.9296465, %v264_v54 }
  0xce   : > { %v1094_v21 = vsub.f32 %v555_v16, %v2893_v5  ;;  %2469 = vpow2.f32 %v1496_v11  ;;  %v1348_v24 = vsub.f32 0.0, %v1220_v14 }
  0xcf   : > { %v2460_v25 = vpop.eup %2459  ;;  %v1502_v26 = vmul.f32 1.442695, %v1349_v19  ;;  %v1223_v27 = vmul.f32 %v1095_v20, %v1095_v20  ;;  %v393_v19 = vmul.f32 6.9296465, %v265_v8  ;;  %v274_v8 = vld [vmem:[%s2822_s23 + $0x368] sm:$0xff] }
  0xd0   : > { %v1222_v28 = vmul.f32 %v1094_v21, %v1094_v21  ;;  %v2462_v29 = vpop.eup %2461  ;;  %1728 = vst.msk [vmem:[%s2918_s28 + $0x98] sm:$0xff] %vm1708_vm0, %v2460_v25  ;;  %v1500_v30 = vmul.f32 1.442695, %v1348_v24  ;;  %v570_v31 = vpop.permute.xlu1 %569  ;;  %v267_v24 = vld [vmem:[%s2822_s23 + $0x330] sm:$0xff] }
  0xd1   : > { %v565_v32 = vpop.permute.xlu0 %564  ;;  %1727 = vst.msk [vmem:[%s2918_s28 + $0x90] sm:$0xff] %vm1708_vm0, %v2462_v29  ;;  %2471 = vpow2.f32 %v1502_v26  ;;  %v1351_v35 = vsub.f32 0.0, %v1223_v27  ;;  %v1097_v37 = vsub.f32 %v570_v31, %v2893_v5  ;;  %889 = vperm.xlu1 %2422, %v386_v17   ;;  %884 = vperm.xlu0 %2421, %v385_v18   ;;  %v394_v18 = vmul.f32 6.9296465, %v266_v7 }
  0xd2   : > { %v1350_v36 = vsub.f32 0.0, %v1222_v28  ;;  %2473 = vpow2.f32 %v1500_v30  ;;  %v1096_v40 = vsub.f32 %v565_v32, %v2893_v5 }
  0xd3   : > { %v2464_v41 = vpop.eup %2463  ;;  %v1506_v42 = vmul.f32 1.442695, %v1351_v35  ;;  %v1225_v44 = vmul.f32 %v1097_v37, %v1097_v37  ;;  %v395_v35 = vmul.f32 6.9296465, %v267_v24  ;;  %v276_v24 = vld [vmem:[%s2822_s23 + $0x378] sm:$0xff] }
  0xd4   : > { %v1504_v43 = vmul.f32 1.442695, %v1350_v36  ;;  %v2466_v45 = vpop.eup %2465  ;;  %1730 = vst.msk [vmem:[%s2918_s28 + $0xa8] sm:$0xff] %vm1708_vm0, %v2464_v41  ;;  %v1224_v46 = vmul.f32 %v1096_v40, %v1096_v40  ;;  %v580_v47 = vpop.permute.xlu1 %579  ;;  %v269_v40 = vld [vmem:[%s2822_s23 + $0x340] sm:$0xff] }
  0xd5   : > { %v575_v48 = vpop.permute.xlu0 %574  ;;  %1729 = vst.msk [vmem:[%s2918_s28 + $0xa0] sm:$0xff] %vm1708_vm0, %v2466_v45  ;;  %2475 = vpow2.f32 %v1506_v42  ;;  %v1353_v51 = vsub.f32 0.0, %v1225_v44  ;;  %v1099_v52 = vsub.f32 %v580_v47, %v2893_v5  ;;  %899 = vperm.xlu1 %2422, %v388_v33   ;;  %894 = vperm.xlu0 %2421, %v387_v34   ;;  %v396_v34 = vmul.f32 6.9296465, %v268_v23 }
  0xd6   : > { %v1098_v53 = vsub.f32 %v575_v48, %v2893_v5  ;;  %2477 = vpow2.f32 %v1504_v43  ;;  %v1352_v56 = vsub.f32 0.0, %v1224_v46 }
  0xd7   : > { %v2468_v57 = vpop.eup %2467  ;;  %v1510_v58 = vmul.f32 1.442695, %v1353_v51  ;;  %v1227_v59 = vmul.f32 %v1099_v52, %v1099_v52  ;;  %v397_v51 = vmul.f32 6.9296465, %v269_v40  ;;  %v278_v40 = vld [vmem:[%s2822_s23 + $0x388] sm:$0xff] }
  0xd8   : > { %v1226_v60 = vmul.f32 %v1098_v53, %v1098_v53  ;;  %v2470_v61 = vpop.eup %2469  ;;  %1732 = vst.msk [vmem:[%s2918_s28 + $0xb8] sm:$0xff] %vm1708_vm0, %v2468_v57  ;;  %v1508_v62 = vmul.f32 1.442695, %v1352_v56  ;;  %v590_v63 = vpop.permute.xlu1 %589  ;;  %v271_v56 = vld [vmem:[%s2822_s23 + $0x350] sm:$0xff] }
  0xd9   : > { %v585_v0 = vpop.permute.xlu0 %584  ;;  %1731 = vst.msk [vmem:[%s2918_s28 + $0xb0] sm:$0xff] %vm1708_vm0, %v2470_v61  ;;  %2479 = vpow2.f32 %v1510_v58  ;;  %v1355_v3 = vsub.f32 0.0, %v1227_v59  ;;  %v1101_v6 = vsub.f32 %v590_v63, %v2893_v5  ;;  %909 = vperm.xlu1 %2422, %v390_v49   ;;  %904 = vperm.xlu0 %2421, %v389_v50   ;;  %v398_v50 = vmul.f32 6.9296465, %v270_v39 }
  0xda   : > { %v1354_v4 = vsub.f32 0.0, %v1226_v60  ;;  %2481 = vpow2.f32 %v1508_v62  ;;  %v1100_v9 = vsub.f32 %v585_v0, %v2893_v5 }
  0xdb   : > { %v2472_v10 = vpop.eup %2471  ;;  %v1514_v11 = vmul.f32 1.442695, %v1355_v3  ;;  %v1229_v13 = vmul.f32 %v1101_v6, %v1101_v6  ;;  %v399_v3 = vmul.f32 6.9296465, %v271_v56  ;;  %v280_v56 = vld [vmem:[%s2822_s23 + $0x398] sm:$0xff] }
  0xdc   : > { %v1512_v12 = vmul.f32 1.442695, %v1354_v4  ;;  %v2474_v14 = vpop.eup %2473  ;;  %1734 = vst.msk [vmem:[%s2918_s28 + $0xc8] sm:$0xff] %vm1708_vm0, %v2472_v10  ;;  %v1228_v15 = vmul.f32 %v1100_v9, %v1100_v9  ;;  %v600_v16 = vpop.permute.xlu1 %599  ;;  %v273_v9 = vld [vmem:[%s2822_s23 + $0x360] sm:$0xff] }
  0xdd   : > { %v595_v17 = vpop.permute.xlu0 %594  ;;  %1733 = vst.msk [vmem:[%s2918_s28 + $0xc0] sm:$0xff] %vm1708_vm0, %v2474_v14  ;;  %2483 = vpow2.f32 %v1514_v11  ;;  %v1357_v20 = vsub.f32 0.0, %v1229_v13  ;;  %v1103_v21 = vsub.f32 %v600_v16, %v2893_v5  ;;  %919 = vperm.xlu1 %2422, %v392_v1   ;;  %914 = vperm.xlu0 %2421, %v391_v2   ;;  %v400_v2 = vmul.f32 6.9296465, %v272_v55 }
  0xde   : > { %v1102_v22 = vsub.f32 %v595_v17, %v2893_v5  ;;  %2485 = vpow2.f32 %v1512_v12  ;;  %v1356_v25 = vsub.f32 0.0, %v1228_v15 }
  0xdf   : > { %v2476_v26 = vpop.eup %2475  ;;  %v1518_v27 = vmul.f32 1.442695, %v1357_v20  ;;  %v1231_v28 = vmul.f32 %v1103_v21, %v1103_v21  ;;  %v401_v20 = vmul.f32 6.9296465, %v273_v9  ;;  %v282_v9 = vld [vmem:[%s2822_s23 + $0x3a8] sm:$0xff] }
  0xe0   : > { %v1230_v29 = vmul.f32 %v1102_v22, %v1102_v22  ;;  %v2478_v30 = vpop.eup %2477  ;;  %1736 = vst.msk [vmem:[%s2918_s28 + $0xd8] sm:$0xff] %vm1708_vm0, %v2476_v26  ;;  %v1516_v31 = vmul.f32 1.442695, %v1356_v25  ;;  %v610_v32 = vpop.permute.xlu1 %609  ;;  %v275_v25 = vld [vmem:[%s2822_s23 + $0x370] sm:$0xff] }
  0xe1   : > { %v605_v33 = vpop.permute.xlu0 %604  ;;  %1735 = vst.msk [vmem:[%s2918_s28 + $0xd0] sm:$0xff] %vm1708_vm0, %v2478_v30  ;;  %2487 = vpow2.f32 %v1518_v27  ;;  %v1359_v36 = vsub.f32 0.0, %v1231_v28  ;;  %v1105_v38 = vsub.f32 %v610_v32, %v2893_v5  ;;  %929 = vperm.xlu1 %2422, %v394_v18   ;;  %924 = vperm.xlu0 %2421, %v393_v19   ;;  %v402_v19 = vmul.f32 6.9296465, %v274_v8 }
  0xe2   : > { %v1358_v37 = vsub.f32 0.0, %v1230_v29  ;;  %2489 = vpow2.f32 %v1516_v31  ;;  %v1104_v41 = vsub.f32 %v605_v33, %v2893_v5 }
  0xe3   : > { %v2480_v42 = vpop.eup %2479  ;;  %v1522_v43 = vmul.f32 1.442695, %v1359_v36  ;;  %v1233_v45 = vmul.f32 %v1105_v38, %v1105_v38  ;;  %v403_v36 = vmul.f32 6.9296465, %v275_v25  ;;  %v284_v25 = vld [vmem:[%s2822_s23 + $0x3b8] sm:$0xff] }
  0xe4   : > { %v1520_v44 = vmul.f32 1.442695, %v1358_v37  ;;  %v2482_v46 = vpop.eup %2481  ;;  %1738 = vst.msk [vmem:[%s2918_s28 + $0xe8] sm:$0xff] %vm1708_vm0, %v2480_v42  ;;  %v1232_v47 = vmul.f32 %v1104_v41, %v1104_v41  ;;  %v620_v48 = vpop.permute.xlu1 %619  ;;  %v277_v41 = vld [vmem:[%s2822_s23 + $0x380] sm:$0xff] }
  0xe5   : > { %v615_v49 = vpop.permute.xlu0 %614  ;;  %1737 = vst.msk [vmem:[%s2918_s28 + $0xe0] sm:$0xff] %vm1708_vm0, %v2482_v46  ;;  %2491 = vpow2.f32 %v1522_v43  ;;  %v1361_v52 = vsub.f32 0.0, %v1233_v45  ;;  %v1107_v53 = vsub.f32 %v620_v48, %v2893_v5  ;;  %939 = vperm.xlu1 %2422, %v396_v34   ;;  %934 = vperm.xlu0 %2421, %v395_v35   ;;  %v404_v35 = vmul.f32 6.9296465, %v276_v24 }
  0xe6   : > { %v1106_v54 = vsub.f32 %v615_v49, %v2893_v5  ;;  %2493 = vpow2.f32 %v1520_v44  ;;  %v1360_v57 = vsub.f32 0.0, %v1232_v47 }
  0xe7   : > { %v2484_v58 = vpop.eup %2483  ;;  %v1526_v59 = vmul.f32 1.442695, %v1361_v52  ;;  %v1235_v60 = vmul.f32 %v1107_v53, %v1107_v53  ;;  %v405_v52 = vmul.f32 6.9296465, %v277_v41  ;;  %v286_v41 = vld [vmem:[%s2822_s23 + $0x3c8] sm:$0xff] }
  0xe8   : > { %v1234_v61 = vmul.f32 %v1106_v54, %v1106_v54  ;;  %v2486_v62 = vpop.eup %2485  ;;  %1740 = vst.msk [vmem:[%s2918_s28 + $0xf8] sm:$0xff] %vm1708_vm0, %v2484_v58  ;;  %v1524_v63 = vmul.f32 1.442695, %v1360_v57  ;;  %v630_v0 = vpop.permute.xlu1 %629  ;;  %v279_v57 = vld [vmem:[%s2822_s23 + $0x390] sm:$0xff] }
  0xe9   : > { %v625_v1 = vpop.permute.xlu0 %624  ;;  %1739 = vst.msk [vmem:[%s2918_s28 + $0xf0] sm:$0xff] %vm1708_vm0, %v2486_v62  ;;  %2495 = vpow2.f32 %v1526_v59  ;;  %v1363_v4 = vsub.f32 0.0, %v1235_v60  ;;  %v1109_v7 = vsub.f32 %v630_v0, %v2893_v5  ;;  %949 = vperm.xlu1 %2422, %v398_v50   ;;  %944 = vperm.xlu0 %2421, %v397_v51   ;;  %v406_v51 = vmul.f32 6.9296465, %v278_v40 }
  0xea   : > { %v1362_v6 = vsub.f32 0.0, %v1234_v61  ;;  %2497 = vpow2.f32 %v1524_v63  ;;  %v1108_v10 = vsub.f32 %v625_v1, %v2893_v5 }
  0xeb   : > { %v2488_v11 = vpop.eup %2487  ;;  %v1530_v12 = vmul.f32 1.442695, %v1363_v4  ;;  %v1237_v14 = vmul.f32 %v1109_v7, %v1109_v7  ;;  %v3079_v7 = vld [vmem:[%s3561_s1] ss:$0 sm:$0xff] }
  0xec   : > { %v1528_v13 = vmul.f32 1.442695, %v1362_v6  ;;  %v2490_v15 = vpop.eup %2489  ;;  %1742 = vst.msk [vmem:[%s2918_s28 + $0x108] sm:$0xff] %vm1708_vm0, %v2488_v11  ;;  %v1236_v16 = vmul.f32 %v1108_v10, %v1108_v10  ;;  %v640_v17 = vpop.permute.xlu1 %639  ;;  %v281_v10 = vld [vmem:[%s2822_s23 + $0x3a0] sm:$0xff] }
  0xed   : > { %v635_v18 = vpop.permute.xlu0 %634  ;;  %1741 = vst.msk [vmem:[%s2918_s28 + $0x100] sm:$0xff] %vm1708_vm0, %v2490_v15  ;;  %2499 = vpow2.f32 %v1530_v12  ;;  %v1365_v21 = vsub.f32 0.0, %v1237_v14  ;;  %v1111_v22 = vsub.f32 %v640_v17, %v2893_v5  ;;  %959 = vperm.xlu1 %2422, %v400_v2   ;;  %954 = vperm.xlu0 %2421, %v399_v3   ;;  %v407_v3 = vmul.f32 6.9296465, %v279_v57  ;;  %v288_v57 = vld [vmem:[%s2822_s23 + $0x3d8] sm:$0xff] }
  0xee   : > { %v1110_v23 = vsub.f32 %v635_v18, %v2893_v5  ;;  %2501 = vpow2.f32 %v1528_v13  ;;  %v1364_v26 = vsub.f32 0.0, %v1236_v16 }
  0xef   : > { %v2492_v27 = vpop.eup %2491  ;;  %v1534_v28 = vmul.f32 1.442695, %v1365_v21  ;;  %v1239_v29 = vmul.f32 %v1111_v22, %v1111_v22  ;;  %v409_v21 = vmul.f32 6.9296465, %v281_v10  ;;  %v290_v10 = vld [vmem:[%s2822_s23 + $0x3e8] sm:$0xff] }
  0xf0   : > { %v1238_v30 = vmul.f32 %v1110_v23, %v1110_v23  ;;  %v2494_v31 = vpop.eup %2493  ;;  %1744 = vst.msk [vmem:[%s2918_s28 + $0x118] sm:$0xff] %vm1708_vm0, %v2492_v27  ;;  %v1532_v32 = vmul.f32 1.442695, %v1364_v26  ;;  %v650_v33 = vpop.permute.xlu1 %649  ;;  %v283_v26 = vld [vmem:[%s2822_s23 + $0x3b0] sm:$0xff] }
  0xf1   : > { %v645_v34 = vpop.permute.xlu0 %644  ;;  %1743 = vst.msk [vmem:[%s2918_s28 + $0x110] sm:$0xff] %vm1708_vm0, %v2494_v31  ;;  %2503 = vpow2.f32 %v1534_v28  ;;  %v1367_v37 = vsub.f32 0.0, %v1239_v29  ;;  %v1113_v39 = vsub.f32 %v650_v33, %v2893_v5  ;;  %969 = vperm.xlu1 %2422, %v402_v19   ;;  %964 = vperm.xlu0 %2421, %v401_v20   ;;  %v410_v20 = vmul.f32 6.9296465, %v282_v9 }
  0xf2   : > { %v1366_v38 = vsub.f32 0.0, %v1238_v30  ;;  %2505 = vpow2.f32 %v1532_v32  ;;  %v1112_v42 = vsub.f32 %v645_v34, %v2893_v5 }
  0xf3   : > { %v2496_v43 = vpop.eup %2495  ;;  %v1538_v44 = vmul.f32 1.442695, %v1367_v37  ;;  %v1241_v46 = vmul.f32 %v1113_v39, %v1113_v39  ;;  %v411_v37 = vmul.f32 6.9296465, %v283_v26  ;;  %v292_v26 = vld [vmem:[%s2822_s23 + $0x3f8] sm:$0xff] }
  0xf4   : > { %v1536_v45 = vmul.f32 1.442695, %v1366_v38  ;;  %v2498_v47 = vpop.eup %2497  ;;  %1746 = vst.msk [vmem:[%s2918_s28 + $0x128] sm:$0xff] %vm1708_vm0, %v2496_v43  ;;  %v1240_v48 = vmul.f32 %v1112_v42, %v1112_v42  ;;  %v660_v49 = vpop.permute.xlu1 %659  ;;  %v285_v42 = vld [vmem:[%s2822_s23 + $0x3c0] sm:$0xff] }
  0xf5   : > { %v655_v50 = vpop.permute.xlu0 %654  ;;  %1745 = vst.msk [vmem:[%s2918_s28 + $0x120] sm:$0xff] %vm1708_vm0, %v2498_v47  ;;  %2507 = vpow2.f32 %v1538_v44  ;;  %v1369_v53 = vsub.f32 0.0, %v1241_v46  ;;  %v1115_v54 = vsub.f32 %v660_v49, %v2893_v5  ;;  %979 = vperm.xlu1 %2422, %v404_v35   ;;  %974 = vperm.xlu0 %2421, %v403_v36   ;;  %v412_v36 = vmul.f32 6.9296465, %v284_v25 }
  0xf6   : > { %v1114_v55 = vsub.f32 %v655_v50, %v2893_v5  ;;  %2509 = vpow2.f32 %v1536_v45  ;;  %v1368_v58 = vsub.f32 0.0, %v1240_v48  ;;  %v408_v5 = vmul.f32 6.9296465, %v280_v56 }
  0xf7   : > { %v2500_v59 = vpop.eup %2499  ;;  %v1542_v60 = vmul.f32 1.442695, %v1369_v53  ;;  %v1243_v61 = vmul.f32 %v1115_v54, %v1115_v54  ;;  %v413_v53 = vmul.f32 6.9296465, %v285_v42 }
  0xf8   : > { %v1242_v62 = vmul.f32 %v1114_v55, %v1114_v55  ;;  %v2502_v63 = vpop.eup %2501  ;;  %1748 = vst.msk [vmem:[%s2918_s28 + $0x138] sm:$0xff] %vm1708_vm0, %v2500_v59  ;;  %v1540_v0 = vmul.f32 1.442695, %v1368_v58  ;;  %v670_v1 = vpop.permute.xlu1 %669  ;;  %v287_v58 = vld [vmem:[%s2822_s23 + $0x3d0] sm:$0xff] }
  0xf9   : > { %v665_v2 = vpop.permute.xlu0 %664  ;;  %1747 = vst.msk [vmem:[%s2918_s28 + $0x130] sm:$0xff] %vm1708_vm0, %v2502_v63  ;;  %2511 = vpow2.f32 %v1542_v60  ;;  %v1371_v4 = vsub.f32 0.0, %v1243_v61  ;;  %v1117_v8 = vsub.f32 %v670_v1, %v3079_v7  ;;  %989 = vperm.xlu1 %2422, %v406_v51   ;;  %984 = vperm.xlu0 %2421, %v405_v52   ;;  %v414_v52 = vmul.f32 6.9296465, %v286_v41 }
  0xfa   : > { %v1370_v6 = vsub.f32 0.0, %v1242_v62  ;;  %2513 = vpow2.f32 %v1540_v0  ;;  %v1116_v11 = vsub.f32 %v665_v2, %v3079_v7 }
  0xfb   : > { %v2504_v12 = vpop.eup %2503  ;;  %v1546_v13 = vmul.f32 1.442695, %v1371_v4  ;;  %v1245_v15 = vmul.f32 %v1117_v8, %v1117_v8  ;;  %v415_v4 = vmul.f32 6.9296465, %v287_v58 }
  0xfc   : > { %v1544_v14 = vmul.f32 1.442695, %v1370_v6  ;;  %v2506_v16 = vpop.eup %2505  ;;  %1750 = vst.msk [vmem:[%s2918_s28 + $0x148] sm:$0xff] %vm1708_vm0, %v2504_v12  ;;  %v1244_v17 = vmul.f32 %v1116_v11, %v1116_v11  ;;  %v680_v18 = vpop.permute.xlu1 %679  ;;  %v289_v11 = vld [vmem:[%s2822_s23 + $0x3e0] sm:$0xff] }
  0xfd   : > { %v675_v19 = vpop.permute.xlu0 %674  ;;  %1749 = vst.msk [vmem:[%s2918_s28 + $0x140] sm:$0xff] %vm1708_vm0, %v2506_v16  ;;  %2515 = vpow2.f32 %v1546_v13  ;;  %v1373_v22 = vsub.f32 0.0, %v1245_v15  ;;  %v1119_v23 = vsub.f32 %v680_v18, %v3079_v7  ;;  %999 = vperm.xlu1 %2422, %v408_v5   ;;  %994 = vperm.xlu0 %2421, %v407_v3   ;;  %v416_v3 = vmul.f32 6.9296465, %v288_v57 }
  0xfe   : > { %v1118_v24 = vsub.f32 %v675_v19, %v3079_v7  ;;  %2517 = vpow2.f32 %v1544_v14  ;;  %v1372_v27 = vsub.f32 0.0, %v1244_v17 }
  0xff   : > { %v2508_v28 = vpop.eup %2507  ;;  %v1550_v29 = vmul.f32 1.442695, %v1373_v22  ;;  %v1247_v30 = vmul.f32 %v1119_v23, %v1119_v23  ;;  %v417_v22 = vmul.f32 6.9296465, %v289_v11 }
 0x100   : > { %v1246_v31 = vmul.f32 %v1118_v24, %v1118_v24  ;;  %v2510_v32 = vpop.eup %2509  ;;  %1752 = vst.msk [vmem:[%s2918_s28 + $0x158] sm:$0xff] %vm1708_vm0, %v2508_v28  ;;  %v1548_v33 = vmul.f32 1.442695, %v1372_v27  ;;  %v690_v34 = vpop.permute.xlu1 %689  ;;  %v291_v27 = vld [vmem:[%s2822_s23 + $0x3f0] sm:$0xff] }
 0x101   : > { %v685_v35 = vpop.permute.xlu0 %684  ;;  %1751 = vst.msk [vmem:[%s2918_s28 + $0x150] sm:$0xff] %vm1708_vm0, %v2510_v32  ;;  %2519 = vpow2.f32 %v1550_v29  ;;  %v1375_v38 = vsub.f32 0.0, %v1247_v30  ;;  %v1121_v40 = vsub.f32 %v690_v34, %v3079_v7  ;;  %1009 = vperm.xlu1 %2422, %v410_v20   ;;  %1004 = vperm.xlu0 %2421, %v409_v21   ;;  %v418_v21 = vmul.f32 6.9296465, %v290_v10 }
 0x102   : > { %v1374_v39 = vsub.f32 0.0, %v1246_v31  ;;  %2521 = vpow2.f32 %v1548_v33  ;;  %v1120_v43 = vsub.f32 %v685_v35, %v3079_v7 }
 0x103   : > { %v2512_v44 = vpop.eup %2511  ;;  %v1554_v45 = vmul.f32 1.442695, %v1375_v38  ;;  %v1249_v47 = vmul.f32 %v1121_v40, %v1121_v40  ;;  %v419_v38 = vmul.f32 6.9296465, %v291_v27 }
 0x104   : > { %v1552_v46 = vmul.f32 1.442695, %v1374_v39  ;;  %v2514_v48 = vpop.eup %2513  ;;  %1754 = vst.msk [vmem:[%s2918_s28 + $0x168] sm:$0xff] %vm1708_vm0, %v2512_v44  ;;  %v1248_v49 = vmul.f32 %v1120_v43, %v1120_v43  ;;  %v700_v50 = vpop.permute.xlu1 %699 }
 0x105   : > { %v695_v51 = vpop.permute.xlu0 %694  ;;  %1753 = vst.msk [vmem:[%s2918_s28 + $0x160] sm:$0xff] %vm1708_vm0, %v2514_v48  ;;  %2523 = vpow2.f32 %v1554_v45  ;;  %v1377_v54 = vsub.f32 0.0, %v1249_v47  ;;  %v1123_v55 = vsub.f32 %v700_v50, %v3079_v7  ;;  %1019 = vperm.xlu1 %2422, %v412_v36   ;;  %1014 = vperm.xlu0 %2421, %v411_v37   ;;  %v420_v37 = vmul.f32 6.9296465, %v292_v26 }
 0x106   : > { %v1122_v56 = vsub.f32 %v695_v51, %v3079_v7  ;;  %2525 = vpow2.f32 %v1552_v46  ;;  %v1376_v59 = vsub.f32 0.0, %v1248_v49 }
 0x107   : > { %v2516_v60 = vpop.eup %2515  ;;  %v1558_v61 = vmul.f32 1.442695, %v1377_v54  ;;  %v1251_v62 = vmul.f32 %v1123_v55, %v1123_v55 }
 0x108   : > { %v1250_v63 = vmul.f32 %v1122_v56, %v1122_v56  ;;  %v2518_v0 = vpop.eup %2517  ;;  %1756 = vst.msk [vmem:[%s2918_s28 + $0x178] sm:$0xff] %vm1708_vm0, %v2516_v60  ;;  %v1556_v1 = vmul.f32 1.442695, %v1376_v59  ;;  %v710_v2 = vpop.permute.xlu1 %709 }
 0x109   : > { %v705_v5 = vpop.permute.xlu0 %704  ;;  %1755 = vst.msk [vmem:[%s2918_s28 + $0x170] sm:$0xff] %vm1708_vm0, %v2518_v0  ;;  %2527 = vpow2.f32 %v1558_v61  ;;  %v1379_v6 = vsub.f32 0.0, %v1251_v62  ;;  %v1125_v9 = vsub.f32 %v710_v2, %v3079_v7  ;;  %1029 = vperm.xlu1 %2422, %v414_v52   ;;  %1024 = vperm.xlu0 %2421, %v413_v53  }
 0x10a   : > { %v1378_v8 = vsub.f32 0.0, %v1250_v63  ;;  %2529 = vpow2.f32 %v1556_v1  ;;  %v1124_v12 = vsub.f32 %v705_v5, %v3079_v7 }
 0x10b   : > { %v2520_v13 = vpop.eup %2519  ;;  %v1562_v14 = vmul.f32 1.442695, %v1379_v6  ;;  %v1253_v16 = vmul.f32 %v1125_v9, %v1125_v9 }
 0x10c   : > { %v1560_v15 = vmul.f32 1.442695, %v1378_v8  ;;  %v2522_v17 = vpop.eup %2521  ;;  %1758 = vst.msk [vmem:[%s2918_s28 + $0x188] sm:$0xff] %vm1708_vm0, %v2520_v13  ;;  %v1252_v18 = vmul.f32 %v1124_v12, %v1124_v12  ;;  %v720_v19 = vpop.permute.xlu1 %719 }
 0x10d   : > { %v715_v20 = vpop.permute.xlu0 %714  ;;  %1757 = vst.msk [vmem:[%s2918_s28 + $0x180] sm:$0xff] %vm1708_vm0, %v2522_v17  ;;  %2531 = vpow2.f32 %v1562_v14  ;;  %v1381_v23 = vsub.f32 0.0, %v1253_v16  ;;  %v1127_v24 = vsub.f32 %v720_v19, %v3079_v7  ;;  %1039 = vperm.xlu1 %2422, %v416_v3   ;;  %1034 = vperm.xlu0 %2421, %v415_v4  }
 0x10e   : > { %v1126_v25 = vsub.f32 %v715_v20, %v3079_v7  ;;  %2533 = vpow2.f32 %v1560_v15  ;;  %v1380_v28 = vsub.f32 0.0, %v1252_v18 }
 0x10f   : > { %v2524_v29 = vpop.eup %2523  ;;  %v1566_v30 = vmul.f32 1.442695, %v1381_v23  ;;  %v1255_v31 = vmul.f32 %v1127_v24, %v1127_v24 }
 0x110   : > { %v1254_v32 = vmul.f32 %v1126_v25, %v1126_v25  ;;  %v2526_v33 = vpop.eup %2525  ;;  %1760 = vst.msk [vmem:[%s2918_s28 + $0x198] sm:$0xff] %vm1708_vm0, %v2524_v29  ;;  %v1564_v34 = vmul.f32 1.442695, %v1380_v28  ;;  %v730_v35 = vpop.permute.xlu1 %729 }
 0x111   : > { %v725_v36 = vpop.permute.xlu0 %724  ;;  %1759 = vst.msk [vmem:[%s2918_s28 + $0x190] sm:$0xff] %vm1708_vm0, %v2526_v33  ;;  %2535 = vpow2.f32 %v1566_v30  ;;  %v1383_v39 = vsub.f32 0.0, %v1255_v31  ;;  %v1129_v41 = vsub.f32 %v730_v35, %v3079_v7  ;;  %1049 = vperm.xlu1 %2422, %v418_v21   ;;  %1044 = vperm.xlu0 %2421, %v417_v22  }
 0x112   : > { %v1382_v40 = vsub.f32 0.0, %v1254_v32  ;;  %2537 = vpow2.f32 %v1564_v34  ;;  %v1128_v42 = vsub.f32 %v725_v36, %v3079_v7 }
 0x113   : > { %v2528_v43 = vpop.eup %2527  ;;  %v1570_v44 = vmul.f32 1.442695, %v1383_v39  ;;  %v1257_v46 = vmul.f32 %v1129_v41, %v1129_v41 }
 0x114   : > { %v1568_v45 = vmul.f32 1.442695, %v1382_v40  ;;  %v2530_v47 = vpop.eup %2529  ;;  %1762 = vst.msk [vmem:[%s2918_s28 + $0x1a8] sm:$0xff] %vm1708_vm0, %v2528_v43  ;;  %v1256_v48 = vmul.f32 %v1128_v42, %v1128_v42  ;;  %v740_v49 = vpop.permute.xlu1 %739 }
 0x115   : > { %v735_v50 = vpop.permute.xlu0 %734  ;;  %1761 = vst.msk [vmem:[%s2918_s28 + $0x1a0] sm:$0xff] %vm1708_vm0, %v2530_v47  ;;  %2539 = vpow2.f32 %v1570_v44  ;;  %v1385_v51 = vsub.f32 0.0, %v1257_v46  ;;  %v1131_v52 = vsub.f32 %v740_v49, %v3079_v7  ;;  %1059 = vperm.xlu1 %2422, %v420_v37   ;;  %1054 = vperm.xlu0 %2421, %v419_v38  }
 0x116   : > { %v1130_v53 = vsub.f32 %v735_v50, %v3079_v7  ;;  %2541 = vpow2.f32 %v1568_v45  ;;  %v1384_v54 = vsub.f32 0.0, %v1256_v48 }
 0x117   : > { %v2532_v55 = vpop.eup %2531  ;;  %v1574_v56 = vmul.f32 1.442695, %v1385_v51  ;;  %v1259_v57 = vmul.f32 %v1131_v52, %v1131_v52 }
 0x118   : > { %v1258_v58 = vmul.f32 %v1130_v53, %v1130_v53  ;;  %v2534_v59 = vpop.eup %2533  ;;  %1764 = vst.msk [vmem:[%s2918_s28 + $0x1b8] sm:$0xff] %vm1708_vm0, %v2532_v55  ;;  %v1572_v60 = vmul.f32 1.442695, %v1384_v54  ;;  %v750_v61 = vpop.permute.xlu1 %749 }
 0x119   : > { %v745_v62 = vpop.permute.xlu0 %744  ;;  %1763 = vst.msk [vmem:[%s2918_s28 + $0x1b0] sm:$0xff] %vm1708_vm0, %v2534_v59  ;;  %2543 = vpow2.f32 %v1574_v56  ;;  %v1387_v63 = vsub.f32 0.0, %v1259_v57  ;;  %v1133_v1 = vsub.f32 %v750_v61, %v3079_v7 }
 0x11a   : > { %v1386_v0 = vsub.f32 0.0, %v1258_v58  ;;  %2545 = vpow2.f32 %v1572_v60  ;;  %v1132_v2 = vsub.f32 %v745_v62, %v3079_v7 }
 0x11b   : > { %v2536_v5 = vpop.eup %2535  ;;  %v1578_v3 = vmul.f32 1.442695, %v1387_v63  ;;  %v1261_v6 = vmul.f32 %v1133_v1, %v1133_v1 }
 0x11c   : > { %v1576_v4 = vmul.f32 1.442695, %v1386_v0  ;;  %v2538_v8 = vpop.eup %2537  ;;  %1766 = vst.msk [vmem:[%s2918_s28 + $0x1c8] sm:$0xff] %vm1708_vm0, %v2536_v5  ;;  %v1260_v9 = vmul.f32 %v1132_v2, %v1132_v2  ;;  %v760_v10 = vpop.permute.xlu1 %759 }
 0x11d   : > { %v755_v11 = vpop.permute.xlu0 %754  ;;  %1765 = vst.msk [vmem:[%s2918_s28 + $0x1c0] sm:$0xff] %vm1708_vm0, %v2538_v8  ;;  %2547 = vpow2.f32 %v1578_v3  ;;  %v1389_v12 = vsub.f32 0.0, %v1261_v6  ;;  %v1135_v13 = vsub.f32 %v760_v10, %v3079_v7 }
 0x11e   : > { %v1134_v14 = vsub.f32 %v755_v11, %v3079_v7  ;;  %2549 = vpow2.f32 %v1576_v4  ;;  %v1388_v15 = vsub.f32 0.0, %v1260_v9 }
 0x11f   : > { %v2540_v16 = vpop.eup %2539  ;;  %v1582_v17 = vmul.f32 1.442695, %v1389_v12  ;;  %v1263_v18 = vmul.f32 %v1135_v13, %v1135_v13 }
 0x120   : > { %v1262_v19 = vmul.f32 %v1134_v14, %v1134_v14  ;;  %v2542_v20 = vpop.eup %2541  ;;  %1768 = vst.msk [vmem:[%s2918_s28 + $0x1d8] sm:$0xff] %vm1708_vm0, %v2540_v16  ;;  %v1580_v21 = vmul.f32 1.442695, %v1388_v15  ;;  %v770_v22 = vpop.permute.xlu1 %769 }
 0x121   : > { %v765_v23 = vpop.permute.xlu0 %764  ;;  %1767 = vst.msk [vmem:[%s2918_s28 + $0x1d0] sm:$0xff] %vm1708_vm0, %v2542_v20  ;;  %2551 = vpow2.f32 %v1582_v17  ;;  %v1391_v24 = vsub.f32 0.0, %v1263_v18  ;;  %v1137_v26 = vsub.f32 %v770_v22, %v3079_v7 }
 0x122   : > { %v1390_v25 = vsub.f32 0.0, %v1262_v19  ;;  %2553 = vpow2.f32 %v1580_v21  ;;  %v1136_v27 = vsub.f32 %v765_v23, %v3079_v7 }
 0x123   : > { %v2544_v28 = vpop.eup %2543  ;;  %v1586_v29 = vmul.f32 1.442695, %v1391_v24  ;;  %v1265_v31 = vmul.f32 %v1137_v26, %v1137_v26 }
 0x124   : > { %v1584_v30 = vmul.f32 1.442695, %v1390_v25  ;;  %v2546_v32 = vpop.eup %2545  ;;  %1770 = vst.msk [vmem:[%s2918_s28 + $0x1e8] sm:$0xff] %vm1708_vm0, %v2544_v28  ;;  %v1264_v33 = vmul.f32 %v1136_v27, %v1136_v27  ;;  %v780_v34 = vpop.permute.xlu1 %779 }
 0x125   : > { %v775_v35 = vpop.permute.xlu0 %774  ;;  %1769 = vst.msk [vmem:[%s2918_s28 + $0x1e0] sm:$0xff] %vm1708_vm0, %v2546_v32  ;;  %2555 = vpow2.f32 %v1586_v29  ;;  %v1393_v36 = vsub.f32 0.0, %v1265_v31  ;;  %v1139_v37 = vsub.f32 %v780_v34, %v3079_v7 }
 0x126   : > { %v1138_v38 = vsub.f32 %v775_v35, %v3079_v7  ;;  %2557 = vpow2.f32 %v1584_v30  ;;  %v1392_v39 = vsub.f32 0.0, %v1264_v33 }
 0x127   : > { %v2548_v40 = vpop.eup %2547  ;;  %v1590_v41 = vmul.f32 1.442695, %v1393_v36  ;;  %v1267_v42 = vmul.f32 %v1139_v37, %v1139_v37 }
 0x128   : > { %v1266_v43 = vmul.f32 %v1138_v38, %v1138_v38  ;;  %v2550_v44 = vpop.eup %2549  ;;  %1772 = vst.msk [vmem:[%s2918_s28 + $0x1f8] sm:$0xff] %vm1708_vm0, %v2548_v40  ;;  %v1588_v45 = vmul.f32 1.442695, %v1392_v39  ;;  %v790_v46 = vpop.permute.xlu1 %789 }
 0x129   : > { %v785_v47 = vpop.permute.xlu0 %784  ;;  %1771 = vst.msk [vmem:[%s2918_s28 + $0x1f0] sm:$0xff] %vm1708_vm0, %v2550_v44  ;;  %2559 = vpow2.f32 %v1590_v41  ;;  %v1395_v48 = vsub.f32 0.0, %v1267_v42  ;;  %v1141_v50 = vsub.f32 %v790_v46, %v3079_v7 }
 0x12a   : > { %v1394_v49 = vsub.f32 0.0, %v1266_v43  ;;  %2561 = vpow2.f32 %v1588_v45  ;;  %v1140_v51 = vsub.f32 %v785_v47, %v3079_v7 }
 0x12b   : > { %v2552_v52 = vpop.eup %2551  ;;  %v1594_v53 = vmul.f32 1.442695, %v1395_v48  ;;  %v1269_v55 = vmul.f32 %v1141_v50, %v1141_v50 }
 0x12c   : > { %v1592_v54 = vmul.f32 1.442695, %v1394_v49  ;;  %v2554_v56 = vpop.eup %2553  ;;  %1774 = vst.msk [vmem:[%s2918_s28 + $0x208] sm:$0xff] %vm1708_vm0, %v2552_v52  ;;  %v1268_v57 = vmul.f32 %v1140_v51, %v1140_v51  ;;  %v800_v58 = vpop.permute.xlu1 %799 }
 0x12d   : > { %v795_v59 = vpop.permute.xlu0 %794  ;;  %1773 = vst.msk [vmem:[%s2918_s28 + $0x200] sm:$0xff] %vm1708_vm0, %v2554_v56  ;;  %2563 = vpow2.f32 %v1594_v53  ;;  %v1397_v60 = vsub.f32 0.0, %v1269_v55  ;;  %v1143_v61 = vsub.f32 %v800_v58, %v3079_v7 }
 0x12e   : > { %v1142_v62 = vsub.f32 %v795_v59, %v3079_v7  ;;  %2565 = vpow2.f32 %v1592_v54  ;;  %v1396_v63 = vsub.f32 0.0, %v1268_v57 }
 0x12f   : > { %v2556_v0 = vpop.eup %2555  ;;  %v1598_v1 = vmul.f32 1.442695, %v1397_v60  ;;  %v1271_v2 = vmul.f32 %v1143_v61, %v1143_v61 }
 0x130   : > { %v1270_v5 = vmul.f32 %v1142_v62, %v1142_v62  ;;  %v2558_v3 = vpop.eup %2557  ;;  %1776 = vst.msk [vmem:[%s2918_s28 + $0x218] sm:$0xff] %vm1708_vm0, %v2556_v0  ;;  %v1596_v4 = vmul.f32 1.442695, %v1396_v63  ;;  %v810_v6 = vpop.permute.xlu1 %809 }
 0x131   : > { %v805_v8 = vpop.permute.xlu0 %804  ;;  %1775 = vst.msk [vmem:[%s2918_s28 + $0x210] sm:$0xff] %vm1708_vm0, %v2558_v3  ;;  %2567 = vpow2.f32 %v1598_v1  ;;  %v1399_v9 = vsub.f32 0.0, %v1271_v2  ;;  %v1145_v11 = vsub.f32 %v810_v6, %v3079_v7 }
 0x132   : > { %v1398_v10 = vsub.f32 0.0, %v1270_v5  ;;  %2569 = vpow2.f32 %v1596_v4  ;;  %v1144_v12 = vsub.f32 %v805_v8, %v3079_v7 }
 0x133   : > { %v2560_v13 = vpop.eup %2559  ;;  %v1602_v14 = vmul.f32 1.442695, %v1399_v9  ;;  %v1273_v16 = vmul.f32 %v1145_v11, %v1145_v11 }
 0x134   : > { %v1600_v15 = vmul.f32 1.442695, %v1398_v10  ;;  %v2562_v17 = vpop.eup %2561  ;;  %1778 = vst.msk [vmem:[%s2918_s28 + $0x228] sm:$0xff] %vm1708_vm0, %v2560_v13  ;;  %v1272_v18 = vmul.f32 %v1144_v12, %v1144_v12  ;;  %v820_v19 = vpop.permute.xlu1 %819 }
 0x135   : > { %v815_v20 = vpop.permute.xlu0 %814  ;;  %1777 = vst.msk [vmem:[%s2918_s28 + $0x220] sm:$0xff] %vm1708_vm0, %v2562_v17  ;;  %2571 = vpow2.f32 %v1602_v14  ;;  %v1401_v21 = vsub.f32 0.0, %v1273_v16  ;;  %v1147_v22 = vsub.f32 %v820_v19, %v3079_v7 }
 0x136   : > { %v1146_v23 = vsub.f32 %v815_v20, %v3079_v7  ;;  %2573 = vpow2.f32 %v1600_v15  ;;  %v1400_v24 = vsub.f32 0.0, %v1272_v18 }
 0x137   : > { %v2564_v25 = vpop.eup %2563  ;;  %v1606_v26 = vmul.f32 1.442695, %v1401_v21  ;;  %v1275_v27 = vmul.f32 %v1147_v22, %v1147_v22 }
 0x138   : > { %v1274_v28 = vmul.f32 %v1146_v23, %v1146_v23  ;;  %v2566_v29 = vpop.eup %2565  ;;  %1780 = vst.msk [vmem:[%s2918_s28 + $0x238] sm:$0xff] %vm1708_vm0, %v2564_v25  ;;  %v1604_v30 = vmul.f32 1.442695, %v1400_v24  ;;  %v830_v31 = vpop.permute.xlu1 %829 }
 0x139   : > { %v825_v32 = vpop.permute.xlu0 %824  ;;  %1779 = vst.msk [vmem:[%s2918_s28 + $0x230] sm:$0xff] %vm1708_vm0, %v2566_v29  ;;  %2575 = vpow2.f32 %v1606_v26  ;;  %v1403_v33 = vsub.f32 0.0, %v1275_v27  ;;  %v1149_v35 = vsub.f32 %v830_v31, %v3079_v7 }
 0x13a   : > { %v1402_v34 = vsub.f32 0.0, %v1274_v28  ;;  %2577 = vpow2.f32 %v1604_v30  ;;  %v1148_v36 = vsub.f32 %v825_v32, %v3079_v7 }
 0x13b   : > { %v2568_v37 = vpop.eup %2567  ;;  %v1610_v38 = vmul.f32 1.442695, %v1403_v33  ;;  %v1277_v40 = vmul.f32 %v1149_v35, %v1149_v35 }
 0x13c   : > { %v1608_v39 = vmul.f32 1.442695, %v1402_v34  ;;  %v2570_v41 = vpop.eup %2569  ;;  %1782 = vst.msk [vmem:[%s2918_s28 + $0x248] sm:$0xff] %vm1708_vm0, %v2568_v37  ;;  %v1276_v42 = vmul.f32 %v1148_v36, %v1148_v36  ;;  %v840_v43 = vpop.permute.xlu1 %839 }
 0x13d   : > { %v835_v44 = vpop.permute.xlu0 %834  ;;  %1781 = vst.msk [vmem:[%s2918_s28 + $0x240] sm:$0xff] %vm1708_vm0, %v2570_v41  ;;  %2579 = vpow2.f32 %v1610_v38  ;;  %v1405_v45 = vsub.f32 0.0, %v1277_v40  ;;  %v1151_v46 = vsub.f32 %v840_v43, %v3079_v7 }
 0x13e   : > { %v1150_v47 = vsub.f32 %v835_v44, %v3079_v7  ;;  %2581 = vpow2.f32 %v1608_v39  ;;  %v1404_v48 = vsub.f32 0.0, %v1276_v42 }
 0x13f   : > { %v2572_v49 = vpop.eup %2571  ;;  %v1614_v50 = vmul.f32 1.442695, %v1405_v45  ;;  %v1279_v51 = vmul.f32 %v1151_v46, %v1151_v46 }
 0x140   : > { %v1278_v52 = vmul.f32 %v1150_v47, %v1150_v47  ;;  %v2574_v53 = vpop.eup %2573  ;;  %1784 = vst.msk [vmem:[%s2918_s28 + $0x258] sm:$0xff] %vm1708_vm0, %v2572_v49  ;;  %v1612_v54 = vmul.f32 1.442695, %v1404_v48  ;;  %v850_v55 = vpop.permute.xlu1 %849 }
 0x141   : > { %v845_v56 = vpop.permute.xlu0 %844  ;;  %1783 = vst.msk [vmem:[%s2918_s28 + $0x250] sm:$0xff] %vm1708_vm0, %v2574_v53  ;;  %2583 = vpow2.f32 %v1614_v50  ;;  %v1407_v57 = vsub.f32 0.0, %v1279_v51  ;;  %v1153_v59 = vsub.f32 %v850_v55, %v3079_v7 }
 0x142   : > { %v1406_v58 = vsub.f32 0.0, %v1278_v52  ;;  %2585 = vpow2.f32 %v1612_v54  ;;  %v1152_v60 = vsub.f32 %v845_v56, %v3079_v7 }
 0x143   : > { %v2576_v61 = vpop.eup %2575  ;;  %v1618_v62 = vmul.f32 1.442695, %v1407_v57  ;;  %v1281_v0 = vmul.f32 %v1153_v59, %v1153_v59 }
 0x144   : > { %v1616_v63 = vmul.f32 1.442695, %v1406_v58  ;;  %v2578_v1 = vpop.eup %2577  ;;  %1786 = vst.msk [vmem:[%s2918_s28 + $0x268] sm:$0xff] %vm1708_vm0, %v2576_v61  ;;  %v1280_v2 = vmul.f32 %v1152_v60, %v1152_v60  ;;  %v860_v5 = vpop.permute.xlu1 %859 }
 0x145   : > { %v855_v3 = vpop.permute.xlu0 %854  ;;  %1785 = vst.msk [vmem:[%s2918_s28 + $0x260] sm:$0xff] %vm1708_vm0, %v2578_v1  ;;  %2587 = vpow2.f32 %v1618_v62  ;;  %v1409_v4 = vsub.f32 0.0, %v1281_v0  ;;  %v1155_v6 = vsub.f32 %v860_v5, %v3079_v7 }
 0x146   : > { %v1154_v8 = vsub.f32 %v855_v3, %v3079_v7  ;;  %2589 = vpow2.f32 %v1616_v63  ;;  %v1408_v9 = vsub.f32 0.0, %v1280_v2 }
 0x147   : > { %v2580_v10 = vpop.eup %2579  ;;  %v1622_v11 = vmul.f32 1.442695, %v1409_v4  ;;  %v1283_v12 = vmul.f32 %v1155_v6, %v1155_v6 }
 0x148   : > { %v1282_v13 = vmul.f32 %v1154_v8, %v1154_v8  ;;  %v2582_v14 = vpop.eup %2581  ;;  %1788 = vst.msk [vmem:[%s2918_s28 + $0x278] sm:$0xff] %vm1708_vm0, %v2580_v10  ;;  %v1620_v15 = vmul.f32 1.442695, %v1408_v9  ;;  %v870_v16 = vpop.permute.xlu1 %869 }
 0x149   : > { %v865_v17 = vpop.permute.xlu0 %864  ;;  %1787 = vst.msk [vmem:[%s2918_s28 + $0x270] sm:$0xff] %vm1708_vm0, %v2582_v14  ;;  %2591 = vpow2.f32 %v1622_v11  ;;  %v1411_v18 = vsub.f32 0.0, %v1283_v12  ;;  %v1157_v20 = vsub.f32 %v870_v16, %v3079_v7 }
 0x14a   : > { %v1410_v19 = vsub.f32 0.0, %v1282_v13  ;;  %2593 = vpow2.f32 %v1620_v15  ;;  %v1156_v21 = vsub.f32 %v865_v17, %v3079_v7 }
 0x14b   : > { %v2584_v22 = vpop.eup %2583  ;;  %v1626_v23 = vmul.f32 1.442695, %v1411_v18  ;;  %v1285_v25 = vmul.f32 %v1157_v20, %v1157_v20 }
 0x14c   : > { %v1624_v24 = vmul.f32 1.442695, %v1410_v19  ;;  %v2586_v26 = vpop.eup %2585  ;;  %1790 = vst.msk [vmem:[%s2918_s28 + $0x288] sm:$0xff] %vm1708_vm0, %v2584_v22  ;;  %v1284_v27 = vmul.f32 %v1156_v21, %v1156_v21  ;;  %v880_v28 = vpop.permute.xlu1 %879 }
 0x14d   : > { %v875_v29 = vpop.permute.xlu0 %874  ;;  %1789 = vst.msk [vmem:[%s2918_s28 + $0x280] sm:$0xff] %vm1708_vm0, %v2586_v26  ;;  %2595 = vpow2.f32 %v1626_v23  ;;  %v1413_v30 = vsub.f32 0.0, %v1285_v25  ;;  %v1159_v31 = vsub.f32 %v880_v28, %v3079_v7 }
 0x14e   : > { %v1158_v32 = vsub.f32 %v875_v29, %v3079_v7  ;;  %2597 = vpow2.f32 %v1624_v24  ;;  %v1412_v33 = vsub.f32 0.0, %v1284_v27 }
 0x14f   : > { %v2588_v34 = vpop.eup %2587  ;;  %v1630_v35 = vmul.f32 1.442695, %v1413_v30  ;;  %v1287_v36 = vmul.f32 %v1159_v31, %v1159_v31 }
 0x150   : > { %v1286_v37 = vmul.f32 %v1158_v32, %v1158_v32  ;;  %v2590_v38 = vpop.eup %2589  ;;  %1792 = vst.msk [vmem:[%s2918_s28 + $0x298] sm:$0xff] %vm1708_vm0, %v2588_v34  ;;  %v1628_v39 = vmul.f32 1.442695, %v1412_v33  ;;  %v890_v40 = vpop.permute.xlu1 %889 }
 0x151   : > { %v885_v41 = vpop.permute.xlu0 %884  ;;  %1791 = vst.msk [vmem:[%s2918_s28 + $0x290] sm:$0xff] %vm1708_vm0, %v2590_v38  ;;  %2599 = vpow2.f32 %v1630_v35  ;;  %v1415_v42 = vsub.f32 0.0, %v1287_v36  ;;  %v1161_v44 = vsub.f32 %v890_v40, %v3079_v7 }
 0x152   : > { %v1414_v43 = vsub.f32 0.0, %v1286_v37  ;;  %2601 = vpow2.f32 %v1628_v39  ;;  %v1160_v45 = vsub.f32 %v885_v41, %v3079_v7 }
 0x153   : > { %v2592_v46 = vpop.eup %2591  ;;  %v1634_v47 = vmul.f32 1.442695, %v1415_v42  ;;  %v1289_v49 = vmul.f32 %v1161_v44, %v1161_v44 }
 0x154   : > { %v1632_v48 = vmul.f32 1.442695, %v1414_v43  ;;  %v2594_v50 = vpop.eup %2593  ;;  %1794 = vst.msk [vmem:[%s2918_s28 + $0x2a8] sm:$0xff] %vm1708_vm0, %v2592_v46  ;;  %v1288_v51 = vmul.f32 %v1160_v45, %v1160_v45  ;;  %v900_v52 = vpop.permute.xlu1 %899 }
 0x155   : > { %v895_v53 = vpop.permute.xlu0 %894  ;;  %1793 = vst.msk [vmem:[%s2918_s28 + $0x2a0] sm:$0xff] %vm1708_vm0, %v2594_v50  ;;  %2603 = vpow2.f32 %v1634_v47  ;;  %v1417_v54 = vsub.f32 0.0, %v1289_v49  ;;  %v1163_v55 = vsub.f32 %v900_v52, %v3079_v7 }
 0x156   : > { %v1162_v56 = vsub.f32 %v895_v53, %v3079_v7  ;;  %2605 = vpow2.f32 %v1632_v48  ;;  %v1416_v57 = vsub.f32 0.0, %v1288_v51 }
 0x157   : > { %v2596_v58 = vpop.eup %2595  ;;  %v1638_v59 = vmul.f32 1.442695, %v1417_v54  ;;  %v1291_v60 = vmul.f32 %v1163_v55, %v1163_v55 }
 0x158   : > { %v1290_v61 = vmul.f32 %v1162_v56, %v1162_v56  ;;  %v2598_v62 = vpop.eup %2597  ;;  %1796 = vst.msk [vmem:[%s2918_s28 + $0x2b8] sm:$0xff] %vm1708_vm0, %v2596_v58  ;;  %v1636_v63 = vmul.f32 1.442695, %v1416_v57  ;;  %v910_v0 = vpop.permute.xlu1 %909 }
 0x159   : > { %v905_v1 = vpop.permute.xlu0 %904  ;;  %1795 = vst.msk [vmem:[%s2918_s28 + $0x2b0] sm:$0xff] %vm1708_vm0, %v2598_v62  ;;  %2607 = vpow2.f32 %v1638_v59  ;;  %v1419_v2 = vsub.f32 0.0, %v1291_v60  ;;  %v1165_v3 = vsub.f32 %v910_v0, %v3079_v7 }
 0x15a   : > { %v1418_v5 = vsub.f32 0.0, %v1290_v61  ;;  %2609 = vpow2.f32 %v1636_v63  ;;  %v1164_v4 = vsub.f32 %v905_v1, %v3079_v7 }
 0x15b   : > { %v2600_v6 = vpop.eup %2599  ;;  %v1642_v8 = vmul.f32 1.442695, %v1419_v2  ;;  %v1293_v10 = vmul.f32 %v1165_v3, %v1165_v3 }
 0x15c   : > { %v1640_v9 = vmul.f32 1.442695, %v1418_v5  ;;  %v2602_v11 = vpop.eup %2601  ;;  %1798 = vst.msk [vmem:[%s2918_s28 + $0x2c8] sm:$0xff] %vm1708_vm0, %v2600_v6  ;;  %v1292_v12 = vmul.f32 %v1164_v4, %v1164_v4  ;;  %v920_v13 = vpop.permute.xlu1 %919 }
 0x15d   : > { %v915_v14 = vpop.permute.xlu0 %914  ;;  %1797 = vst.msk [vmem:[%s2918_s28 + $0x2c0] sm:$0xff] %vm1708_vm0, %v2602_v11  ;;  %2611 = vpow2.f32 %v1642_v8  ;;  %v1421_v15 = vsub.f32 0.0, %v1293_v10  ;;  %v1167_v16 = vsub.f32 %v920_v13, %v3079_v7 }
 0x15e   : > { %v1166_v17 = vsub.f32 %v915_v14, %v3079_v7  ;;  %2613 = vpow2.f32 %v1640_v9  ;;  %v1420_v18 = vsub.f32 0.0, %v1292_v12 }
 0x15f   : > { %v2604_v19 = vpop.eup %2603  ;;  %v1646_v20 = vmul.f32 1.442695, %v1421_v15  ;;  %v1295_v21 = vmul.f32 %v1167_v16, %v1167_v16 }
 0x160   : > { %v1294_v22 = vmul.f32 %v1166_v17, %v1166_v17  ;;  %v2606_v23 = vpop.eup %2605  ;;  %1800 = vst.msk [vmem:[%s2918_s28 + $0x2d8] sm:$0xff] %vm1708_vm0, %v2604_v19  ;;  %v1644_v24 = vmul.f32 1.442695, %v1420_v18  ;;  %v930_v25 = vpop.permute.xlu1 %929 }
 0x161   : > { %v925_v26 = vpop.permute.xlu0 %924  ;;  %1799 = vst.msk [vmem:[%s2918_s28 + $0x2d0] sm:$0xff] %vm1708_vm0, %v2606_v23  ;;  %2615 = vpow2.f32 %v1646_v20  ;;  %v1423_v27 = vsub.f32 0.0, %v1295_v21  ;;  %v1169_v29 = vsub.f32 %v930_v25, %v3079_v7 }
 0x162   : > { %v1422_v28 = vsub.f32 0.0, %v1294_v22  ;;  %2617 = vpow2.f32 %v1644_v24  ;;  %v1168_v30 = vsub.f32 %v925_v26, %v3079_v7 }
 0x163   : > { %v2608_v31 = vpop.eup %2607  ;;  %v1650_v32 = vmul.f32 1.442695, %v1423_v27  ;;  %v1297_v34 = vmul.f32 %v1169_v29, %v1169_v29 }
 0x164   : > { %v1648_v33 = vmul.f32 1.442695, %v1422_v28  ;;  %v2610_v35 = vpop.eup %2609  ;;  %1802 = vst.msk [vmem:[%s2918_s28 + $0x2e8] sm:$0xff] %vm1708_vm0, %v2608_v31  ;;  %v1296_v36 = vmul.f32 %v1168_v30, %v1168_v30  ;;  %v940_v37 = vpop.permute.xlu1 %939 }
 0x165   : > { %v935_v38 = vpop.permute.xlu0 %934  ;;  %1801 = vst.msk [vmem:[%s2918_s28 + $0x2e0] sm:$0xff] %vm1708_vm0, %v2610_v35  ;;  %2619 = vpow2.f32 %v1650_v32  ;;  %v1425_v39 = vsub.f32 0.0, %v1297_v34  ;;  %v1171_v40 = vsub.f32 %v940_v37, %v3079_v7 }
 0x166   : > { %v1170_v41 = vsub.f32 %v935_v38, %v3079_v7  ;;  %2621 = vpow2.f32 %v1648_v33  ;;  %v1424_v42 = vsub.f32 0.0, %v1296_v36 }
 0x167   : > { %v2612_v43 = vpop.eup %2611  ;;  %v1654_v44 = vmul.f32 1.442695, %v1425_v39  ;;  %v1299_v45 = vmul.f32 %v1171_v40, %v1171_v40 }
 0x168   : > { %v1298_v46 = vmul.f32 %v1170_v41, %v1170_v41  ;;  %v2614_v47 = vpop.eup %2613  ;;  %1804 = vst.msk [vmem:[%s2918_s28 + $0x2f8] sm:$0xff] %vm1708_vm0, %v2612_v43  ;;  %v1652_v48 = vmul.f32 1.442695, %v1424_v42  ;;  %v950_v49 = vpop.permute.xlu1 %949 }
 0x169   : > { %v945_v50 = vpop.permute.xlu0 %944  ;;  %1803 = vst.msk [vmem:[%s2918_s28 + $0x2f0] sm:$0xff] %vm1708_vm0, %v2614_v47  ;;  %2623 = vpow2.f32 %v1654_v44  ;;  %v1427_v51 = vsub.f32 0.0, %v1299_v45  ;;  %v1173_v53 = vsub.f32 %v950_v49, %v3079_v7 }
 0x16a   : > { %v1426_v52 = vsub.f32 0.0, %v1298_v46  ;;  %2625 = vpow2.f32 %v1652_v48  ;;  %v1172_v54 = vsub.f32 %v945_v50, %v3079_v7 }
 0x16b   : > { %v2616_v55 = vpop.eup %2615  ;;  %v1658_v56 = vmul.f32 1.442695, %v1427_v51  ;;  %v1301_v58 = vmul.f32 %v1173_v53, %v1173_v53 }
 0x16c   : > { %v1656_v57 = vmul.f32 1.442695, %v1426_v52  ;;  %v2618_v59 = vpop.eup %2617  ;;  %1806 = vst.msk [vmem:[%s2918_s28 + $0x308] sm:$0xff] %vm1708_vm0, %v2616_v55  ;;  %v1300_v60 = vmul.f32 %v1172_v54, %v1172_v54  ;;  %v960_v61 = vpop.permute.xlu1 %959 }
 0x16d   : > { %v955_v62 = vpop.permute.xlu0 %954  ;;  %1805 = vst.msk [vmem:[%s2918_s28 + $0x300] sm:$0xff] %vm1708_vm0, %v2618_v59  ;;  %2627 = vpow2.f32 %v1658_v56  ;;  %v1429_v63 = vsub.f32 0.0, %v1301_v58  ;;  %v1175_v0 = vsub.f32 %v960_v61, %v3079_v7 }
 0x16e   : > { %v1174_v1 = vsub.f32 %v955_v62, %v3079_v7  ;;  %2629 = vpow2.f32 %v1656_v57  ;;  %v1428_v2 = vsub.f32 0.0, %v1300_v60  ;;  %v3276_v7 = vld [vmem:[%s3561_s1] ss:$0 sm:$0xff] }
 0x16f   : > { %v2620_v5 = vpop.eup %2619  ;;  %v1662_v3 = vmul.f32 1.442695, %v1429_v63  ;;  %v1303_v4 = vmul.f32 %v1175_v0, %v1175_v0 }
 0x170   : > { %v1302_v6 = vmul.f32 %v1174_v1, %v1174_v1  ;;  %v2622_v8 = vpop.eup %2621  ;;  %1808 = vst.msk [vmem:[%s2918_s28 + $0x318] sm:$0xff] %vm1708_vm0, %v2620_v5  ;;  %v1660_v9 = vmul.f32 1.442695, %v1428_v2  ;;  %v970_v10 = vpop.permute.xlu1 %969 }
 0x171   : > { %v965_v11 = vpop.permute.xlu0 %964  ;;  %1807 = vst.msk [vmem:[%s2918_s28 + $0x310] sm:$0xff] %vm1708_vm0, %v2622_v8  ;;  %2631 = vpow2.f32 %v1662_v3  ;;  %v1431_v12 = vsub.f32 0.0, %v1303_v4  ;;  %v1177_v14 = vsub.f32 %v970_v10, %v3276_v7 }
 0x172   : > { %v1430_v13 = vsub.f32 0.0, %v1302_v6  ;;  %2633 = vpow2.f32 %v1660_v9  ;;  %v1176_v15 = vsub.f32 %v965_v11, %v3276_v7 }
 0x173   : > { %v2624_v16 = vpop.eup %2623  ;;  %v1666_v17 = vmul.f32 1.442695, %v1431_v12  ;;  %v1305_v19 = vmul.f32 %v1177_v14, %v1177_v14 }
 0x174   : > { %v1664_v18 = vmul.f32 1.442695, %v1430_v13  ;;  %v2626_v20 = vpop.eup %2625  ;;  %1810 = vst.msk [vmem:[%s2918_s28 + $0x328] sm:$0xff] %vm1708_vm0, %v2624_v16  ;;  %v1304_v21 = vmul.f32 %v1176_v15, %v1176_v15  ;;  %v980_v22 = vpop.permute.xlu1 %979 }
 0x175   : > { %v975_v23 = vpop.permute.xlu0 %974  ;;  %1809 = vst.msk [vmem:[%s2918_s28 + $0x320] sm:$0xff] %vm1708_vm0, %v2626_v20  ;;  %2635 = vpow2.f32 %v1666_v17  ;;  %v1433_v24 = vsub.f32 0.0, %v1305_v19  ;;  %v1179_v25 = vsub.f32 %v980_v22, %v3276_v7 }
 0x176   : > { %v1178_v26 = vsub.f32 %v975_v23, %v3276_v7  ;;  %2637 = vpow2.f32 %v1664_v18  ;;  %v1432_v27 = vsub.f32 0.0, %v1304_v21 }
 0x177   : > { %v2628_v28 = vpop.eup %2627  ;;  %v1670_v29 = vmul.f32 1.442695, %v1433_v24  ;;  %v1307_v30 = vmul.f32 %v1179_v25, %v1179_v25 }
 0x178   : > { %v1306_v31 = vmul.f32 %v1178_v26, %v1178_v26  ;;  %v2630_v32 = vpop.eup %2629  ;;  %1812 = vst.msk [vmem:[%s2918_s28 + $0x338] sm:$0xff] %vm1708_vm0, %v2628_v28  ;;  %v1668_v33 = vmul.f32 1.442695, %v1432_v27  ;;  %v990_v34 = vpop.permute.xlu1 %989 }
 0x179   : > { %v985_v35 = vpop.permute.xlu0 %984  ;;  %1811 = vst.msk [vmem:[%s2918_s28 + $0x330] sm:$0xff] %vm1708_vm0, %v2630_v32  ;;  %2639 = vpow2.f32 %v1670_v29  ;;  %v1435_v36 = vsub.f32 0.0, %v1307_v30  ;;  %v1181_v38 = vsub.f32 %v990_v34, %v3276_v7 }
 0x17a   : > { %v1434_v37 = vsub.f32 0.0, %v1306_v31  ;;  %2641 = vpow2.f32 %v1668_v33  ;;  %v1180_v39 = vsub.f32 %v985_v35, %v3276_v7 }
 0x17b   : > { %v2632_v40 = vpop.eup %2631  ;;  %v1674_v41 = vmul.f32 1.442695, %v1435_v36  ;;  %v1309_v43 = vmul.f32 %v1181_v38, %v1181_v38 }
 0x17c   : > { %v1672_v42 = vmul.f32 1.442695, %v1434_v37  ;;  %v2634_v44 = vpop.eup %2633  ;;  %1814 = vst.msk [vmem:[%s2918_s28 + $0x348] sm:$0xff] %vm1708_vm0, %v2632_v40  ;;  %v1308_v45 = vmul.f32 %v1180_v39, %v1180_v39  ;;  %v1000_v46 = vpop.permute.xlu1 %999 }
 0x17d   : > { %v995_v47 = vpop.permute.xlu0 %994  ;;  %1813 = vst.msk [vmem:[%s2918_s28 + $0x340] sm:$0xff] %vm1708_vm0, %v2634_v44  ;;  %2643 = vpow2.f32 %v1674_v41  ;;  %v1437_v48 = vsub.f32 0.0, %v1309_v43  ;;  %v1183_v49 = vsub.f32 %v1000_v46, %v3276_v7 }
 0x17e   : > { %v1182_v50 = vsub.f32 %v995_v47, %v3276_v7  ;;  %2645 = vpow2.f32 %v1672_v42  ;;  %v1436_v51 = vsub.f32 0.0, %v1308_v45 }
 0x17f   : > { %v2636_v52 = vpop.eup %2635  ;;  %v1678_v53 = vmul.f32 1.442695, %v1437_v48  ;;  %v1311_v54 = vmul.f32 %v1183_v49, %v1183_v49 }
 0x180   : > { %v1310_v55 = vmul.f32 %v1182_v50, %v1182_v50  ;;  %v2638_v56 = vpop.eup %2637  ;;  %1816 = vst.msk [vmem:[%s2918_s28 + $0x358] sm:$0xff] %vm1708_vm0, %v2636_v52  ;;  %v1676_v57 = vmul.f32 1.442695, %v1436_v51  ;;  %v1010_v58 = vpop.permute.xlu1 %1009 }
 0x181   : > { %v1005_v59 = vpop.permute.xlu0 %1004  ;;  %1815 = vst.msk [vmem:[%s2918_s28 + $0x350] sm:$0xff] %vm1708_vm0, %v2638_v56  ;;  %2647 = vpow2.f32 %v1678_v53  ;;  %v1439_v60 = vsub.f32 0.0, %v1311_v54  ;;  %v1185_v62 = vsub.f32 %v1010_v58, %v3276_v7 }
 0x182   : > { %v1438_v61 = vsub.f32 0.0, %v1310_v55  ;;  %2649 = vpow2.f32 %v1676_v57  ;;  %v1184_v63 = vsub.f32 %v1005_v59, %v3276_v7 }
 0x183   : > { %v2640_v0 = vpop.eup %2639  ;;  %v1682_v1 = vmul.f32 1.442695, %v1439_v60  ;;  %v1313_v5 = vmul.f32 %v1185_v62, %v1185_v62 }
 0x184   : > { %v1680_v2 = vmul.f32 1.442695, %v1438_v61  ;;  %v2642_v3 = vpop.eup %2641  ;;  %1818 = vst.msk [vmem:[%s2918_s28 + $0x368] sm:$0xff] %vm1708_vm0, %v2640_v0  ;;  %v1312_v4 = vmul.f32 %v1184_v63, %v1184_v63  ;;  %v1020_v6 = vpop.permute.xlu1 %1019 }
 0x185   : > { %v1015_v8 = vpop.permute.xlu0 %1014  ;;  %1817 = vst.msk [vmem:[%s2918_s28 + $0x360] sm:$0xff] %vm1708_vm0, %v2642_v3  ;;  %2651 = vpow2.f32 %v1682_v1  ;;  %v1441_v9 = vsub.f32 0.0, %v1313_v5  ;;  %v1187_v10 = vsub.f32 %v1020_v6, %v3276_v7 }
 0x186   : > { %v1186_v11 = vsub.f32 %v1015_v8, %v3276_v7  ;;  %2653 = vpow2.f32 %v1680_v2  ;;  %v1440_v12 = vsub.f32 0.0, %v1312_v4 }
 0x187   : > { %v2644_v13 = vpop.eup %2643  ;;  %v1686_v14 = vmul.f32 1.442695, %v1441_v9  ;;  %v1315_v15 = vmul.f32 %v1187_v10, %v1187_v10 }
 0x188   : > { %v1314_v16 = vmul.f32 %v1186_v11, %v1186_v11  ;;  %v2646_v17 = vpop.eup %2645  ;;  %1820 = vst.msk [vmem:[%s2918_s28 + $0x378] sm:$0xff] %vm1708_vm0, %v2644_v13  ;;  %v1684_v18 = vmul.f32 1.442695, %v1440_v12  ;;  %v1030_v19 = vpop.permute.xlu1 %1029 }
 0x189   : > { %v1025_v20 = vpop.permute.xlu0 %1024  ;;  %1819 = vst.msk [vmem:[%s2918_s28 + $0x370] sm:$0xff] %vm1708_vm0, %v2646_v17  ;;  %2655 = vpow2.f32 %v1686_v14  ;;  %v1443_v21 = vsub.f32 0.0, %v1315_v15  ;;  %v1189_v23 = vsub.f32 %v1030_v19, %v3276_v7 }
 0x18a   : > { %v1442_v22 = vsub.f32 0.0, %v1314_v16  ;;  %2657 = vpow2.f32 %v1684_v18  ;;  %v1188_v24 = vsub.f32 %v1025_v20, %v3276_v7 }
 0x18b   : > { %v2648_v25 = vpop.eup %2647  ;;  %v1690_v26 = vmul.f32 1.442695, %v1443_v21  ;;  %v1317_v28 = vmul.f32 %v1189_v23, %v1189_v23 }
 0x18c   : > { %v1688_v27 = vmul.f32 1.442695, %v1442_v22  ;;  %v2650_v29 = vpop.eup %2649  ;;  %1822 = vst.msk [vmem:[%s2918_s28 + $0x388] sm:$0xff] %vm1708_vm0, %v2648_v25  ;;  %v1316_v30 = vmul.f32 %v1188_v24, %v1188_v24  ;;  %v1040_v31 = vpop.permute.xlu1 %1039 }
 0x18d   : > { %v1035_v32 = vpop.permute.xlu0 %1034  ;;  %1821 = vst.msk [vmem:[%s2918_s28 + $0x380] sm:$0xff] %vm1708_vm0, %v2650_v29  ;;  %2659 = vpow2.f32 %v1690_v26  ;;  %v1445_v33 = vsub.f32 0.0, %v1317_v28  ;;  %v1191_v34 = vsub.f32 %v1040_v31, %v3276_v7 }
 0x18e   : > { %v1190_v35 = vsub.f32 %v1035_v32, %v3276_v7  ;;  %2661 = vpow2.f32 %v1688_v27  ;;  %v1444_v36 = vsub.f32 0.0, %v1316_v30 }
 0x18f   : > { %v2652_v37 = vpop.eup %2651  ;;  %v1694_v38 = vmul.f32 1.442695, %v1445_v33  ;;  %v1319_v39 = vmul.f32 %v1191_v34, %v1191_v34 }
 0x190   : > { %v1318_v40 = vmul.f32 %v1190_v35, %v1190_v35  ;;  %v2654_v41 = vpop.eup %2653  ;;  %1824 = vst.msk [vmem:[%s2918_s28 + $0x398] sm:$0xff] %vm1708_vm0, %v2652_v37  ;;  %v1692_v42 = vmul.f32 1.442695, %v1444_v36  ;;  %v1050_v43 = vpop.permute.xlu1 %1049 }
 0x191   : > { %v1045_v44 = vpop.permute.xlu0 %1044  ;;  %1823 = vst.msk [vmem:[%s2918_s28 + $0x390] sm:$0xff] %vm1708_vm0, %v2654_v41  ;;  %2663 = vpow2.f32 %v1694_v38  ;;  %v1447_v45 = vsub.f32 0.0, %v1319_v39  ;;  %v1193_v47 = vsub.f32 %v1050_v43, %v3276_v7 }
 0x192   : > { %v1446_v46 = vsub.f32 0.0, %v1318_v40  ;;  %2665 = vpow2.f32 %v1692_v42  ;;  %v1192_v48 = vsub.f32 %v1045_v44, %v3276_v7 }
 0x193   : > { %v2656_v49 = vpop.eup %2655  ;;  %v1698_v50 = vmul.f32 1.442695, %v1447_v45  ;;  %v1321_v52 = vmul.f32 %v1193_v47, %v1193_v47 }
 0x194   : > { %v1696_v51 = vmul.f32 1.442695, %v1446_v46  ;;  %v2658_v53 = vpop.eup %2657  ;;  %1826 = vst.msk [vmem:[%s2918_s28 + $0x3a8] sm:$0xff] %vm1708_vm0, %v2656_v49  ;;  %v1320_v54 = vmul.f32 %v1192_v48, %v1192_v48  ;;  %v1060_v55 = vpop.permute.xlu1 %1059 }
 0x195   : > { %v1055_v56 = vpop.permute.xlu0 %1054  ;;  %1825 = vst.msk [vmem:[%s2918_s28 + $0x3a0] sm:$0xff] %vm1708_vm0, %v2658_v53  ;;  %2667 = vpow2.f32 %v1698_v50  ;;  %v1449_v57 = vsub.f32 0.0, %v1321_v52  ;;  %v1195_v58 = vsub.f32 %v1060_v55, %v3276_v7 }
 0x196   : > { %v1194_v59 = vsub.f32 %v1055_v56, %v3276_v7  ;;  %2669 = vpow2.f32 %v1696_v51  ;;  %v1448_v60 = vsub.f32 0.0, %v1320_v54 }
 0x197   : > { %v2660_v61 = vpop.eup %2659  ;;  %v1702_v62 = vmul.f32 1.442695, %v1449_v57  ;;  %v1323_v63 = vmul.f32 %v1195_v58, %v1195_v58 }
 0x198   : > { %v1322_v0 = vmul.f32 %v1194_v59, %v1194_v59  ;;  %v2662_v1 = vpop.eup %2661  ;;  %1828 = vst.msk [vmem:[%s2918_s28 + $0x3b8] sm:$0xff] %vm1708_vm0, %v2660_v61  ;;  %v1700_v2 = vmul.f32 1.442695, %v1448_v60 }
 0x199   : > { %1827 = vst.msk [vmem:[%s2918_s28 + $0x3b0] sm:$0xff] %vm1708_vm0, %v2662_v1  ;;  %2671 = vpow2.f32 %v1702_v62  ;;  %v1451_v5 = vsub.f32 0.0, %v1323_v63 }
 0x19a   : > { %v1450_v3 = vsub.f32 0.0, %v1322_v0  ;;  %2673 = vpow2.f32 %v1700_v2 }
 0x19b   : > { %v2664_v7 = vpop.eup %2663  ;;  %v1706_v4 = vmul.f32 1.442695, %v1451_v5 }
 0x19c   : > { %v1704_v6 = vmul.f32 1.442695, %v1450_v3  ;;  %v2666_v8 = vpop.eup %2665  ;;  %1830 = vst.msk [vmem:[%s2918_s28 + $0x3c8] sm:$0xff] %vm1708_vm0, %v2664_v7 }
 0x19d   : > { %1829 = vst.msk [vmem:[%s2918_s28 + $0x3c0] sm:$0xff] %vm1708_vm0, %v2666_v8  ;;  %2675 = vpow2.f32 %v1706_v4 }
 0x19e   : > { %2677 = vpow2.f32 %v1704_v6 }
 0x19f   : > { %v2668_v9 = vpop.eup %2667 }
 0x1a0   : > { %v2670_v10 = vpop.eup %2669  ;;  %1832 = vst.msk [vmem:[%s2918_s28 + $0x3d8] sm:$0xff] %vm1708_vm0, %v2668_v9 }
 0x1a1   : > { %1831 = vst.msk [vmem:[%s2918_s28 + $0x3d0] sm:$0xff] %vm1708_vm0, %v2670_v10 }
 0x1a3   : > { %v2672_v11 = vpop.eup %2671  ;;  %1843 = sbr.rel (!%p2810_p4) target bundleno = 498 (0x1f2), region = 32 }
 0x1a4   : > { %v2674_v12 = vpop.eup %2673  ;;  %1834 = vst.msk [vmem:[%s2918_s28 + $0x3e8] sm:$0xff] %vm1708_vm0, %v2672_v11 }
 0x1a5   : > { %1833 = vst.msk [vmem:[%s2918_s28 + $0x3e0] sm:$0xff] %vm1708_vm0, %v2674_v12 }
 0x1a7   : > { %v2676_v13 = vpop.eup %2675 }
 0x1a8   : > { %v2678_v14 = vpop.eup %2677  ;;  %1836 = vst.msk [vmem:[%s2918_s28 + $0x3f8] sm:$0xff] %vm1708_vm0, %v2676_v13 }
 0x1a9   : > { %1835 = vst.msk [vmem:[%s2918_s28 + $0x3f0] sm:$0xff] %vm1708_vm0, %v2678_v14 }
 0x1aa   : > { %s3573_s5 = smov (!%p1846_p8, %s1845_s5), 128 }
 0x1ab   : > { %s2314_s11 = sshll.u32 %s3573_s5, 7 }
 0x1ac   : > { %p2317_p9 = scmp.eq.s32.totalorder %s2314_s11, 0 }
 0x1ad   : > { %s3367_s14 = sshrl.u32 (!%p2317_p9), %s3573_s5, 6 }
 0x1ae   : > { %1854 = sbr.rel (%p2317_p9) target bundleno = 498 (0x1f2), region = 36  ;;  %p2318_p10 = scmp.le.s32.totalorder (!%p2317_p9), %s3367_s14, 0 }
 0x1b5   : > { %2260 = sbr.rel (%p2318_p10) target bundleno = 477 (0x1dd), region = 112  ;;  %s3564_s12 = smov (!%p2318_p10), %s3361_s9 }
 0x1b6   : > { %s3565_s15 = smov (!%p2318_p10), %s2918_s28  ;;  %s3376_s17 = smov (!%p2318_p10), 0  }
 0x1b7   : > { %s3378_s18 = smov (!%p2318_p10), 0  }
 0x1bc LB: >> { %v2042_v15 = vld [vmem:[%s2743_s15] sm:$0xff]  ;;  %v2044_v16 = vld [vmem:[%s2743_s15 + $0x8] sm:$0xff]  ;;  %v2046_v17 = vld [vmem:[%s2743_s15 + $0x10] sm:$0xff]  ;;  %s2170_s19 = sadd.s32 1, %s2747_s17  ;;  %s2036_s18 = sadd.s32 1, %s2751_s18   ;;  %s2751_s18 = sphi %s3378_s18, %s2036_s18   ;;  %s2747_s17 = sphi %s3376_s17, %s3568_s17   ;;  %s2743_s15 = sphi %s3565_s15, %s3567_s15   ;;  %s2739_s12 = sphi %s3564_s12, %s3566_s12  }
 0x1bd   : >> { %2043 = vst [vmem:[%s2739_s12] sm:$0xff] %v2042_v15  ;;  %2045 = vst [vmem:[%s2739_s12 + $0x8] sm:$0xff] %v2044_v16  ;;  %v2048_v18 = vld [vmem:[%s2743_s15 + $0x18] sm:$0xff]  ;;  %v2050_v19 = vld [vmem:[%s2743_s15 + $0x20] sm:$0xff]  ;;  %p2171_p11 = scmp.ge.s32.totalorder %s2170_s19, %s3367_s14  ;;  %p2035_p12 = scmp.ge.s32.totalorder %s2036_s18, %s3367_s14 }
 0x1be   : >> { %2047 = vst [vmem:[%s2739_s12 + $0x10] sm:$0xff] %v2046_v17  ;;  %v2052_v20 = vld [vmem:[%s2743_s15 + $0x28] sm:$0xff]  ;;  %2049 = vst [vmem:[%s2739_s12 + $0x18] sm:$0xff] %v2048_v18  ;;  %v2054_v21 = vld [vmem:[%s2743_s15 + $0x30] sm:$0xff] }
 0x1bf   : >> { %2051 = vst [vmem:[%s2739_s12 + $0x20] sm:$0xff] %v2050_v19  ;;  %2053 = vst [vmem:[%s2739_s12 + $0x28] sm:$0xff] %v2052_v20  ;;  %v2056_v22 = vld [vmem:[%s2743_s15 + $0x38] sm:$0xff]  ;;  %v2058_v23 = vld [vmem:[%s2743_s15 + $0x40] sm:$0xff]  ;;  %s3575_s19 = smov (%p2171_p11, %s2170_s19), 0 }
 0x1c0   : >> { %2055 = vst [vmem:[%s2739_s12 + $0x30] sm:$0xff] %v2054_v21  ;;  %2057 = vst [vmem:[%s2739_s12 + $0x38] sm:$0xff] %v2056_v22  ;;  %v2060_v24 = vld [vmem:[%s2743_s15 + $0x48] sm:$0xff]  ;;  %v2062_v25 = vld [vmem:[%s2743_s15 + $0x50] sm:$0xff]  ;;  %s2319_s20 = sshll.u32 %s3575_s19, 9  ;;  %s3568_s17 = smov %s3575_s19 }
 0x1c1   : >> { %2059 = vst [vmem:[%s2739_s12 + $0x40] sm:$0xff] %v2058_v23  ;;  %v2064_v26 = vld [vmem:[%s2743_s15 + $0x58] sm:$0xff]  ;;  %2061 = vst [vmem:[%s2739_s12 + $0x48] sm:$0xff] %v2060_v24  ;;  %v2066_v27 = vld [vmem:[%s2743_s15 + $0x60] sm:$0xff]  ;;  %s3434_s21 = scalar_lea.vmem %s2918_s28, %s2319_s20 [#allocation2]   ;;  %s3437_s22 = scalar_lea.vmem %s3361_s9, %s2319_s20  }
 0x1c2   : >> { %2063 = vst [vmem:[%s2739_s12 + $0x50] sm:$0xff] %v2062_v25  ;;  %2065 = vst [vmem:[%s2739_s12 + $0x58] sm:$0xff] %v2064_v26  ;;  %v2068_v28 = vld [vmem:[%s2743_s15 + $0x68] sm:$0xff]  ;;  %v2070_v29 = vld [vmem:[%s2743_s15 + $0x70] sm:$0xff] }
 0x1c3   : >> { %2067 = vst [vmem:[%s2739_s12 + $0x60] sm:$0xff] %v2066_v27  ;;  %2069 = vst [vmem:[%s2739_s12 + $0x68] sm:$0xff] %v2068_v28  ;;  %v2072_v30 = vld [vmem:[%s2743_s15 + $0x78] sm:$0xff]  ;;  %v2074_v31 = vld [vmem:[%s2743_s15 + $0x80] sm:$0xff] }
 0x1c4   : >> { %2071 = vst [vmem:[%s2739_s12 + $0x70] sm:$0xff] %v2070_v29  ;;  %v2076_v32 = vld [vmem:[%s2743_s15 + $0x88] sm:$0xff]  ;;  %2073 = vst [vmem:[%s2739_s12 + $0x78] sm:$0xff] %v2072_v30  ;;  %v2078_v33 = vld [vmem:[%s2743_s15 + $0x90] sm:$0xff] }
 0x1c5   : >> { %2075 = vst [vmem:[%s2739_s12 + $0x80] sm:$0xff] %v2074_v31  ;;  %2077 = vst [vmem:[%s2739_s12 + $0x88] sm:$0xff] %v2076_v32  ;;  %v2080_v34 = vld [vmem:[%s2743_s15 + $0x98] sm:$0xff]  ;;  %v2082_v35 = vld [vmem:[%s2743_s15 + $0xa0] sm:$0xff] }
 0x1c6   : >> { %2079 = vst [vmem:[%s2739_s12 + $0x90] sm:$0xff] %v2078_v33  ;;  %2081 = vst [vmem:[%s2739_s12 + $0x98] sm:$0xff] %v2080_v34  ;;  %v2084_v36 = vld [vmem:[%s2743_s15 + $0xa8] sm:$0xff]  ;;  %v2086_v37 = vld [vmem:[%s2743_s15 + $0xb0] sm:$0xff] }
 0x1c7   : >> { %2083 = vst [vmem:[%s2739_s12 + $0xa0] sm:$0xff] %v2082_v35  ;;  %v2088_v38 = vld [vmem:[%s2743_s15 + $0xb8] sm:$0xff]  ;;  %2085 = vst [vmem:[%s2739_s12 + $0xa8] sm:$0xff] %v2084_v36  ;;  %v2090_v39 = vld [vmem:[%s2743_s15 + $0xc0] sm:$0xff] }
 0x1c8   : >> { %2087 = vst [vmem:[%s2739_s12 + $0xb0] sm:$0xff] %v2086_v37  ;;  %2089 = vst [vmem:[%s2739_s12 + $0xb8] sm:$0xff] %v2088_v38  ;;  %v2092_v40 = vld [vmem:[%s2743_s15 + $0xc8] sm:$0xff]  ;;  %v2094_v41 = vld [vmem:[%s2743_s15 + $0xd0] sm:$0xff] }
 0x1c9   : >> { %2091 = vst [vmem:[%s2739_s12 + $0xc0] sm:$0xff] %v2090_v39  ;;  %2093 = vst [vmem:[%s2739_s12 + $0xc8] sm:$0xff] %v2092_v40  ;;  %v2096_v42 = vld [vmem:[%s2743_s15 + $0xd8] sm:$0xff]  ;;  %v2098_v43 = vld [vmem:[%s2743_s15 + $0xe0] sm:$0xff] }
 0x1ca   : >> { %2095 = vst [vmem:[%s2739_s12 + $0xd0] sm:$0xff] %v2094_v41  ;;  %v2100_v44 = vld [vmem:[%s2743_s15 + $0xe8] sm:$0xff]  ;;  %2097 = vst [vmem:[%s2739_s12 + $0xd8] sm:$0xff] %v2096_v42  ;;  %v2102_v45 = vld [vmem:[%s2743_s15 + $0xf0] sm:$0xff] }
 0x1cb   : >> { %2099 = vst [vmem:[%s2739_s12 + $0xe0] sm:$0xff] %v2098_v43  ;;  %2101 = vst [vmem:[%s2739_s12 + $0xe8] sm:$0xff] %v2100_v44  ;;  %v2104_v46 = vld [vmem:[%s2743_s15 + $0xf8] sm:$0xff]  ;;  %v2106_v47 = vld [vmem:[%s2743_s15 + $0x100] sm:$0xff] }
 0x1cc   : >> { %2103 = vst [vmem:[%s2739_s12 + $0xf0] sm:$0xff] %v2102_v45  ;;  %2105 = vst [vmem:[%s2739_s12 + $0xf8] sm:$0xff] %v2104_v46  ;;  %v2108_v48 = vld [vmem:[%s2743_s15 + $0x108] sm:$0xff]  ;;  %v2110_v49 = vld [vmem:[%s2743_s15 + $0x110] sm:$0xff] }
 0x1cd   : >> { %2107 = vst [vmem:[%s2739_s12 + $0x100] sm:$0xff] %v2106_v47  ;;  %v2112_v50 = vld [vmem:[%s2743_s15 + $0x118] sm:$0xff]  ;;  %2109 = vst [vmem:[%s2739_s12 + $0x108] sm:$0xff] %v2108_v48  ;;  %v2114_v51 = vld [vmem:[%s2743_s15 + $0x120] sm:$0xff] }
 0x1ce   : >> { %2111 = vst [vmem:[%s2739_s12 + $0x110] sm:$0xff] %v2110_v49  ;;  %2113 = vst [vmem:[%s2739_s12 + $0x118] sm:$0xff] %v2112_v50  ;;  %v2116_v52 = vld [vmem:[%s2743_s15 + $0x128] sm:$0xff]  ;;  %v2118_v53 = vld [vmem:[%s2743_s15 + $0x130] sm:$0xff] }
 0x1cf   : >> { %2115 = vst [vmem:[%s2739_s12 + $0x120] sm:$0xff] %v2114_v51  ;;  %2117 = vst [vmem:[%s2739_s12 + $0x128] sm:$0xff] %v2116_v52  ;;  %v2120_v54 = vld [vmem:[%s2743_s15 + $0x138] sm:$0xff]  ;;  %v2122_v55 = vld [vmem:[%s2743_s15 + $0x140] sm:$0xff] }
 0x1d0   : >> { %2119 = vst [vmem:[%s2739_s12 + $0x130] sm:$0xff] %v2118_v53  ;;  %v2124_v56 = vld [vmem:[%s2743_s15 + $0x148] sm:$0xff]  ;;  %2121 = vst [vmem:[%s2739_s12 + $0x138] sm:$0xff] %v2120_v54  ;;  %v2126_v57 = vld [vmem:[%s2743_s15 + $0x150] sm:$0xff] }
 0x1d1   : >> { %2123 = vst [vmem:[%s2739_s12 + $0x140] sm:$0xff] %v2122_v55  ;;  %2125 = vst [vmem:[%s2739_s12 + $0x148] sm:$0xff] %v2124_v56  ;;  %v2128_v58 = vld [vmem:[%s2743_s15 + $0x158] sm:$0xff]  ;;  %v2130_v59 = vld [vmem:[%s2743_s15 + $0x160] sm:$0xff] }
 0x1d2   : >> { %2127 = vst [vmem:[%s2739_s12 + $0x150] sm:$0xff] %v2126_v57  ;;  %2129 = vst [vmem:[%s2739_s12 + $0x158] sm:$0xff] %v2128_v58  ;;  %v2132_v60 = vld [vmem:[%s2743_s15 + $0x168] sm:$0xff]  ;;  %v2134_v61 = vld [vmem:[%s2743_s15 + $0x170] sm:$0xff] }
 0x1d3   : >> { %2131 = vst [vmem:[%s2739_s12 + $0x160] sm:$0xff] %v2130_v59  ;;  %v2136_v62 = vld [vmem:[%s2743_s15 + $0x178] sm:$0xff]  ;;  %2133 = vst [vmem:[%s2739_s12 + $0x168] sm:$0xff] %v2132_v60  ;;  %v2138_v63 = vld [vmem:[%s2743_s15 + $0x180] sm:$0xff] }
 0x1d4   : >> { %2135 = vst [vmem:[%s2739_s12 + $0x170] sm:$0xff] %v2134_v61  ;;  %2137 = vst [vmem:[%s2739_s12 + $0x178] sm:$0xff] %v2136_v62  ;;  %v2140_v0 = vld [vmem:[%s2743_s15 + $0x188] sm:$0xff]  ;;  %v2142_v1 = vld [vmem:[%s2743_s15 + $0x190] sm:$0xff] }
 0x1d5   : >> { %2139 = vst [vmem:[%s2739_s12 + $0x180] sm:$0xff] %v2138_v63  ;;  %2141 = vst [vmem:[%s2739_s12 + $0x188] sm:$0xff] %v2140_v0  ;;  %v2144_v2 = vld [vmem:[%s2743_s15 + $0x198] sm:$0xff]  ;;  %v2146_v5 = vld [vmem:[%s2743_s15 + $0x1a0] sm:$0xff] }
 0x1d6   : >> { %2143 = vst [vmem:[%s2739_s12 + $0x190] sm:$0xff] %v2142_v1  ;;  %v2148_v3 = vld [vmem:[%s2743_s15 + $0x1a8] sm:$0xff]  ;;  %2145 = vst [vmem:[%s2739_s12 + $0x198] sm:$0xff] %v2144_v2  ;;  %v2150_v7 = vld [vmem:[%s2743_s15 + $0x1b0] sm:$0xff]  ;;  %2038 = sbr.rel (!%p2035_p12) target bundleno = 444 (0x1bc), region = 118 }
 0x1d7   : >> { %2147 = vst [vmem:[%s2739_s12 + $0x1a0] sm:$0xff] %v2146_v5  ;;  %2149 = vst [vmem:[%s2739_s12 + $0x1a8] sm:$0xff] %v2148_v3  ;;  %v2152_v4 = vld [vmem:[%s2743_s15 + $0x1b8] sm:$0xff]  ;;  %v2154_v6 = vld [vmem:[%s2743_s15 + $0x1c0] sm:$0xff] }
 0x1d8   : >> { %2151 = vst [vmem:[%s2739_s12 + $0x1b0] sm:$0xff] %v2150_v7  ;;  %2153 = vst [vmem:[%s2739_s12 + $0x1b8] sm:$0xff] %v2152_v4  ;;  %v2156_v8 = vld [vmem:[%s2743_s15 + $0x1c8] sm:$0xff]  ;;  %v2158_v9 = vld [vmem:[%s2743_s15 + $0x1d0] sm:$0xff] }
 0x1d9   : >> { %2155 = vst [vmem:[%s2739_s12 + $0x1c0] sm:$0xff] %v2154_v6  ;;  %v2160_v10 = vld [vmem:[%s2743_s15 + $0x1d8] sm:$0xff]  ;;  %2157 = vst [vmem:[%s2739_s12 + $0x1c8] sm:$0xff] %v2156_v8  ;;  %v2162_v11 = vld [vmem:[%s2743_s15 + $0x1e0] sm:$0xff] }
 0x1da   : >> { %2159 = vst [vmem:[%s2739_s12 + $0x1d0] sm:$0xff] %v2158_v9  ;;  %2161 = vst [vmem:[%s2739_s12 + $0x1d8] sm:$0xff] %v2160_v10  ;;  %v2164_v12 = vld [vmem:[%s2743_s15 + $0x1e8] sm:$0xff]  ;;  %v2166_v13 = vld [vmem:[%s2743_s15 + $0x1f0] sm:$0xff] }
 0x1db   : >> { %2163 = vst [vmem:[%s2739_s12 + $0x1e0] sm:$0xff] %v2162_v11  ;;  %2165 = vst [vmem:[%s2739_s12 + $0x1e8] sm:$0xff] %v2164_v12  ;;  %v2168_v14 = vld [vmem:[%s2743_s15 + $0x1f8] sm:$0xff]  ;;  %s3567_s15 = smov %s3434_s21 }
 0x1dc   : >> { %2167 = vst [vmem:[%s2739_s12 + $0x1f0] sm:$0xff] %v2166_v13  ;;  %2169 = vst [vmem:[%s2739_s12 + $0x1f8] sm:$0xff] %v2168_v14  ;;  %s3566_s12 = smov %s3437_s22 }
 0x1dd PF: > { %s3542_s23 = sand.u32 63, %s3573_s5   ;;  %s2330_s24 = sshll.u32 %s3367_s14, 9 }
 0x1de   : > { %s2181_s25 = scalar_lea.vmem %s2918_s28, %s2330_s24 [#allocation2]   ;;  %s2183_s26 = scalar_lea.vmem %s3361_s9, %s2330_s24  }
 0x1df   : > { %p2324_p13 = scmp.le.s32.totalorder %s3542_s23, 0 }
 0x1e0   : > { %s2753_s27 = smov (!%p2324_p13), %s2183_s26   ;;  %s2757_s29 = smov (!%p2324_p13), %s2181_s25  }
 0x1e1   : > { %2274 = sbr.rel (%p2324_p13) target bundleno = 498 (0x1f2), region = 123  ;;  %s2761_s30 = smov (!%p2324_p13), 0  }
 0x1e2   : > { %s2765_s3 = smov (!%p2324_p13), 0  }
 0x1e8 LB: >> { %v2193_v15 = vld [vmem:[%s2759_s29] sm:$0xff]  ;;  %s2195_s4 = sadd.s32 1, %s2763_s30  ;;  %s2187_s3 = sadd.s32 1, %s2767_s3   ;;  %s2767_s3 = sphi %s2765_s3, %s2187_s3   ;;  %s2763_s30 = sphi %s2761_s30, %s2762_s30   ;;  %s2759_s29 = sphi %s2757_s29, %s2200_s29   ;;  %s2755_s27 = sphi %s2753_s27, %s2201_s27  }
 0x1e9   : >> { %2194 = vst [vmem:[%s2755_s27] sm:$0xff] %v2193_v15  ;;  %p2196_p0 = scmp.ge.s32.totalorder %s2195_s4, %s3542_s23  ;;  %p2186_p1 = scmp.ge.s32.totalorder %s2187_s3, %s3542_s23 }
 0x1eb   : >> { %s3577_s4 = smov (%p2196_p0, %s2195_s4), 0  ;;  %2189 = sbr.rel (!%p2186_p1) target bundleno = 488 (0x1e8), region = 129 }
 0x1ec   : >> { %s2325_s28 = sshll.u32 %s3577_s4, 3  ;;  %s2762_s30 = smov %s3577_s4  }
 0x1ed   : >> { %s2200_s29 = scalar_lea.vmem %s2181_s25, %s2325_s28 [#allocation2]   ;;  %s2201_s27 = scalar_lea.vmem %s2183_s26, %s2325_s28  }
 0x1f2 PF: > { %p9_p2 = scmp.ge.s32.totalorder %s2800_s13, 5   ;;  %s3569_s9 = smov %s2731_s10 }
 0x1f3   : > { %s3570_s10 = smov %s2808_s16  ;;  %s3571_s11 = smov %s2800_s13 }
 0x1f4   :  { %11 = sbr.rel (!%p9_p2) target bundleno = 2 (0x2), region = 140 }

</bundles_post_ra>
